<compile_context>
chip_gen: v6e
topology: v6e:2x2x1
jax: 0.10.0
libtpu: 0.0.40
codegen_flags: <defaults>
</compile_context>

<pallas_src>
import functools

import jax
import jax.numpy as jnp
from jax.experimental import pallas as pl
from jax.experimental.pallas import tpu as pltpu


LEAKY_SLOPE = 0.2
LANE = 128  # channel padding target (vreg lane width)


def _leaky(x, slope=LEAKY_SLOPE):
    return jnp.where(x >= 0, x, slope * x)


def _reflect_pad_t(x, pad):
    # x: (B, T, C), reflection pad along time (matches nn.ReflectionPad1d).
    return jnp.pad(x, ((0, 0), (pad, pad), (0, 0)), mode="reflect")


# ----------------------------------------------------------------------------
# Fused Pallas kernel: first conv + all ResnetBlocks + last conv
# ----------------------------------------------------------------------------
def _fused_kernel(x_ref, fw_ref, fb_ref, w3_ref, b3_ref, w1s_ref, b1s_ref,
                  lw_ref, lb_ref, o_ref, hp_ref, *, T, dilations, max_pad):
    """One batch element end-to-end.

    x_ref  : (1, T, C) f32 input (channels zero-padded to C=128)
    hp_ref : (T + 2*max_pad, C) f32 VMEM scratch holding the current layer's
             reflect-padded conv input (activation lives in rows [MP, MP+T)).
    Weights are bf16, tap-stacked along the contraction dim:
       fw_ref/lw_ref : (7*C, C),  w3_ref : (NL, 3*C, C),  w1s_ref : (NL, 2*C, C)
    Biases are f32: (1, C) / (NL, 1, C).
    """
    MP = max_pad
    bf16 = jnp.bfloat16

    def reflect_into_hp(sig, pad):
        # Store sig (T, C) f32 at the center and mirror `pad` rows on each side
        # (ReflectionPad1d semantics: boundary row is not repeated).  Mirror
        # rows are sourced from the in-register value, not read back from VMEM.
        hp_ref[MP:MP + T, :] = sig
        for i in range(pad):  # pad <= 8, static unroll of (1, C) row stores
            hp_ref[MP - 1 - i:MP - i, :] = sig[1 + i:2 + i, :]
            hp_ref[MP + T + i:MP + T + 1 + i, :] = sig[T - 2 - i:T - 1 - i, :]

    def conv_from_hp(w_stacked, K, dilation, pad, bias):
        # Dilated conv as ONE MXU matmul: the K shifted (T, C) windows are
        # concatenated along lanes -> (T, K*C) and contracted against the
        # tap-stacked (K*C, C) weight.  f32 accumulation, bias added once.
        base = MP - pad
        taps = [hp_ref[base + k * dilation: base + k * dilation + T, :]
                for k in range(K)]  # static unroll over taps
        xs = jnp.concatenate(taps, axis=-1).astype(bf16)          # (T, K*C)
        return jnp.dot(xs, w_stacked,
                       preferred_element_type=jnp.float32) + bias  # (1,C) bcast

    # ---- ReflectionPad1d(3) + WNConv1d(in, hid, k=7) ----
    reflect_into_hp(x_ref[0], 3)
    h = conv_from_hp(fw_ref[...], 7, 1, 3, fb_ref[...])

    # ---- ResnetBlocks (dilation = 2**n) ----
    for n, d in enumerate(dilations):
        reflect_into_hp(_leaky(h), d)              # pad(leaky(x)) == leaky(pad(x))
        a = _leaky(conv_from_hp(w3_ref[n], 3, d, d, b3_ref[n]))
        # Fused 1x1 main + 1x1 shortcut: [a ; h] @ [[w1],[ws]] + (b1 + bs)
        cat = jnp.concatenate([a, h], axis=-1).astype(bf16)       # (T, 2C)
        h = jnp.dot(cat, w1s_ref[n],
                    preferred_element_type=jnp.float32) + b1s_ref[n]

    # ---- LeakyReLU + ReflectionPad1d(3) + WNConv1d(hid, out, k=7) ----
    reflect_into_hp(_leaky(h), 3)
    out = conv_from_hp(lw_ref[...], 7, 1, 3, lb_ref[...])
    o_ref[0] = out.astype(o_ref.dtype)


# ----------------------------------------------------------------------------
# Wrapper
# ----------------------------------------------------------------------------
def conv1d_resnet_forward(x, params, *, dilations, out_dim):
    """x: (B, T, in_dim) f32 -> (B, T, out_dim) f32."""
    B, T, in_dim = x.shape
    C = params["first_w"].shape[-1]          # lane-padded channel width (128)
    NL = len(dilations)
    max_pad = max(3, max(dilations))
    assert T > max_pad, "ReflectionPad1d requires T > pad (max dilation / 3)"

    # Zero-pad input channels to the lane width (padded channels stay exactly 0
    # through the whole network because the padded weight rows/cols are 0).
    xp = jnp.pad(x, ((0, 0), (0, 0), (0, C - in_dim)))

    kernel = functools.partial(_fused_kernel, T=T, dilations=tuple(dilations),
                               max_pad=max_pad)

    out = pl.pallas_call(
        kernel,
        out_shape=jax.ShapeDtypeStruct((B, T, C), jnp.float32),
        grid=(B,),
        in_specs=[
            pl.BlockSpec((1, T, C), lambda b: (b, 0, 0)),            # x
            pl.BlockSpec((7 * C, C), lambda b: (0, 0)),              # first_w (bf16)
            pl.BlockSpec((1, C), lambda b: (0, 0)),                  # first_b
            pl.BlockSpec((NL, 3 * C, C), lambda b: (0, 0, 0)),       # w3 (tap-stacked)
            pl.BlockSpec((NL, 1, C), lambda b: (0, 0, 0)),           # b3
            pl.BlockSpec((NL, 2 * C, C), lambda b: (0, 0, 0)),       # w1s ([w1;ws])
            pl.BlockSpec((NL, 1, C), lambda b: (0, 0, 0)),           # b1s (b1+bs)
            pl.BlockSpec((7 * C, C), lambda b: (0, 0)),              # last_w
            pl.BlockSpec((1, C), lambda b: (0, 0)),                  # last_b
        ],
        out_specs=pl.BlockSpec((1, T, C), lambda b: (b, 0, 0)),
        scratch_shapes=[pltpu.VMEM((T + 2 * max_pad, C), jnp.float32)],
        compiler_params=pltpu.CompilerParams(
            dimension_semantics=("parallel",),
            vmem_limit_bytes=32 * 1024 * 1024,   # explicit budget, safe on v5e/v6e/v7x
        ),
    )(xp, params["first_w"], params["first_b"],
      params["w3"], params["b3"], params["w1s"], params["b1s"],
      params["last_w"], params["last_b"])

    return out[:, :, :out_dim]   # drop lane padding outside the kernel


# ----------------------------------------------------------------------------
# Parameter construction (weight_norm folded) + lane padding / bf16 packing
# ----------------------------------------------------------------------------
def _wn_conv_params(key, out_ch, in_ch, K):
    kv, kg, kb = jax.random.split(key, 3)
    v = jax.random.normal(kv, (out_ch, in_ch, K), jnp.float32) * 0.05
    g = jax.random.uniform(kg, (out_ch,), jnp.float32, minval=0.5, maxval=1.0)
    norm = jnp.sqrt(jnp.sum(v * v, axis=(1, 2), keepdims=True)) + 1e-12
    w = v / norm * g[:, None, None]                # torch layout (out, in, K)
    b = jax.random.normal(kb, (out_ch,), jnp.float32) * 0.01
    return jnp.transpose(w, (2, 1, 0)), b          # (K, in, out), (out,)


def make_raw_params(key, in_dim, hidden_dim, out_dim, num_layers):
    keys = jax.random.split(key, 2 + 3 * num_layers)
    raw = {}
    raw["first_w"], raw["first_b"] = _wn_conv_params(keys[0], hidden_dim, in_dim, 7)
    blocks = []
    for n in range(num_layers):
        k3, k1, ks = keys[1 + 3 * n], keys[2 + 3 * n], keys[3 + 3 * n]
        w3, b3 = _wn_conv_params(k3, hidden_dim, hidden_dim, 3)
        w1, b1 = _wn_conv_params(k1, hidden_dim, hidden_dim, 1)
        ws, bs = _wn_conv_params(ks, hidden_dim, hidden_dim, 1)
        blocks.append({"w3": w3, "b3": b3,
                       "w1": w1[0], "b1": b1,      # squeeze K=1 -> (Cin, Cout)
                       "ws": ws[0], "bs": bs})
    raw["blocks"] = blocks
    raw["last_w"], raw["last_b"] = _wn_conv_params(keys[-1], out_dim, hidden_dim, 7)
    return raw


def pack_params(raw, C=LANE):
    """Zero-pad channels to C lanes, tap-stack along the contraction dim,
    cast weights to bf16, pre-fuse the per-block 1x1 main + shortcut convs."""
    bf16 = jnp.bfloat16

    def pad_w(w):                                  # (K, ci, co) -> (K*C, C) bf16
        K, ci, co = w.shape
        wp = jnp.zeros((K, C, C), jnp.float32).at[:, :ci, :co].set(w)
        return wp.reshape(K * C, C).astype(bf16)   # row k*C+ci == tap k, chan ci

    def pad_w2(w):                                 # (ci, co) -> (C, C) f32
        ci, co = w.shape
        return jnp.zeros((C, C), jnp.float32).at[:ci, :co].set(w)

    def pad_b(b):                                  # (co,) -> (1, C) f32
        return jnp.zeros((1, C), jnp.float32).at[0, :b.shape[0]].set(b)

    blocks = raw["blocks"]
    w3 = jnp.stack([pad_w(b["w3"]) for b in blocks], axis=0)            # (NL, 3C, C)
    b3 = jnp.stack([pad_b(b["b3"]) for b in blocks], axis=0)            # (NL, 1, C)
    # Fused pointwise: [a ; h] @ [[w1],[ws]] == a@w1 + h@ws ; biases pre-summed.
    w1s = jnp.stack([jnp.concatenate([pad_w2(b["w1"]), pad_w2(b["ws"])], axis=0)
                     for b in blocks], axis=0).astype(bf16)             # (NL, 2C, C)
    b1s = jnp.stack([pad_b(b["b1"]) + pad_b(b["bs"]) for b in blocks], axis=0)

    return {
        "first_w": pad_w(raw["first_w"]), "first_b": pad_b(raw["first_b"]),
        "last_w":  pad_w(raw["last_w"]),  "last_b":  pad_b(raw["last_b"]),
        "w3": w3, "b3": b3, "w1s": w1s, "b1s": b1s,
    }


# ----------------------------------------------------------------------------
# Pure-JAX references
#   * _ref_forward_f32   : exact module semantics, full f32 (bounds bf16 error)
#   * _ref_forward_bf16  : same bf16-input / f32-accum math as the kernel
# ----------------------------------------------------------------------------
def _ref_conv_f32(x_pad, w, b, dilation=1):
    K = w.shape[0]
    T_out = x_pad.shape[1] - dilation * (K - 1)
    acc = jnp.zeros((x_pad.shape[0], T_out, w.shape[2]), jnp.float32) + b
    for k in range(K):
        acc = acc + jnp.einsum("btc,cd->btd",
                               x_pad[:, k * dilation:k * dilation + T_out, :], w[k])
    return acc


def _ref_forward_f32(x, raw, dilations):
    h = _ref_conv_f32(_reflect_pad_t(x, 3), raw["first_w"], raw["first_b"])
    for d, blk in zip(dilations, raw["blocks"]):
        xp = _reflect_pad_t(_leaky(h), d)
        main = _ref_conv_f32(xp, blk["w3"], blk["b3"], dilation=d)
        main = jnp.einsum("btc,cd->btd", _leaky(main), blk["w1"]) + blk["b1"]
        short = jnp.einsum("btc,cd->btd", h, blk["ws"]) + blk["bs"]
        h = short + main
    return _ref_conv_f32(_reflect_pad_t(_leaky(h), 3), raw["last_w"], raw["last_b"])


def _ref_forward_bf16(x, params, dilations, out_dim):
    C = params["first_w"].shape[-1]
    B, T, in_dim = x.shape
    bf16 = jnp.bfloat16

    def conv(xp, w_stacked, b, K, dilation=1):
        T_out = xp.shape[1] - dilation * (K - 1)
        taps = [xp[:, k * dilation:k * dilation + T_out, :] for k in range(K)]
        cat = jnp.concatenate(taps, axis=-1).astype(bf16)           # (B, T, K*C)
        return jnp.einsum("btc,cd->btd", cat, w_stacked,
                          preferred_element_type=jnp.float32) + b

    h = jnp.pad(x, ((0, 0), (0, 0), (0, C - in_dim)))
    h = conv(_reflect_pad_t(h, 3), params["first_w"], params["first_b"], 7)
    for n, d in enumerate(dilations):
        a = _leaky(conv(_reflect_pad_t(_leaky(h), d), params["w3"][n],
                        params["b3"][n], 3, dilation=d))
        cat = jnp.concatenate([a, h], axis=-1).astype(bf16)
        h = jnp.einsum("btc,cd->btd", cat, params["w1s"][n],
                       preferred_element_type=jnp.float32) + params["b1s"][n]
    out = conv(_reflect_pad_t(_leaky(h), 3), params["last_w"], params["last_b"], 7)
    return out[:, :, :out_dim]


# ----------------------------------------------------------------------------
if __name__ == "__main__":
    B, T = 2, 16
    in_dim, hidden_dim, out_dim, num_layers = 8, 32, 4, 4
    dilations = tuple(2 ** n for n in range(num_layers))   # 1, 2, 4, 8

    key = jax.random.PRNGKey(0)
    kx, kp = jax.random.split(key)
    x = jax.random.normal(kx, (B, T, in_dim), jnp.float32)  # (batch, time, feat)

    raw = make_raw_params(kp, in_dim, hidden_dim, out_dim, num_layers)
    params = pack_params(raw, LANE)

    fwd = jax.jit(functools.partial(conv1d_resnet_forward,
                                    dilations=dilations, out_dim=out_dim))
    out = jax.block_until_ready(fwd(x, params))
    assert out.shape == (B, T, out_dim), out.shape

    # Exact-math check against a reference doing the same bf16-input/f32-accum ops.
    ref_matched = jax.block_until_ready(_ref_forward_bf16(x, params, dilations, out_dim))
    err_matched = float(jnp.max(jnp.abs(out - ref_matched)))
    assert err_matched < 2e-3, f"kernel vs matched reference mismatch: {err_matched}"

    # Sanity bound vs the exact f32 module semantics (difference = bf16 matmul-input rounding).
    ref_f32 = jax.block_until_ready(_ref_forward_f32(x, raw, dilations))
    err_f32 = float(jnp.max(jnp.abs(out - ref_f32)))
    assert err_f32 < 1e-1, f"kernel vs f32 reference mismatch too large: {err_f32}"

    print("KERNEL_OK")
</pallas_src>

<mosaic_0001>
module attributes {stable_mosaic.version = 11 : i64} {
  func.func @_fused_kernel(%arg0: i32, %arg1: memref<1x16x128xf32, #tpu.memory_space<vmem>>, %arg2: memref<896x128xbf16, #tpu.memory_space<vmem>>, %arg3: memref<1x128xf32, #tpu.memory_space<vmem>>, %arg4: memref<4x384x128xbf16, #tpu.memory_space<vmem>>, %arg5: memref<4x1x128xf32, #tpu.memory_space<vmem>>, %arg6: memref<4x256x128xbf16, #tpu.memory_space<vmem>>, %arg7: memref<4x1x128xf32, #tpu.memory_space<vmem>>, %arg8: memref<896x128xbf16, #tpu.memory_space<vmem>>, %arg9: memref<1x128xf32, #tpu.memory_space<vmem>>, %arg10: memref<1x16x128xf32, #tpu.memory_space<vmem>>, %arg11: memref<32x128xf32, #tpu.memory_space<vmem>>) attributes {dimension_semantics = [#tpu.dimension_semantics<parallel>], iteration_bounds = array<i64: 2>, scalar_prefetch = 0 : i64, scratch_operands = 1 : i64, tpu.core_type = #tpu.core_type<tc>, window_params = [{transform_indices = @transform_0, window_bounds = array<i64: 1, 16, 128>}, {pipeline_mode = #tpu.pipeline_mode<synchronous>, transform_indices = @transform_1, window_bounds = array<i64: 896, 128>}, {pipeline_mode = #tpu.pipeline_mode<synchronous>, transform_indices = @transform_2, window_bounds = array<i64: 1, 128>}, {pipeline_mode = #tpu.pipeline_mode<synchronous>, transform_indices = @transform_3, window_bounds = array<i64: 4, 384, 128>}, {pipeline_mode = #tpu.pipeline_mode<synchronous>, transform_indices = @transform_4, window_bounds = array<i64: 4, 1, 128>}, {pipeline_mode = #tpu.pipeline_mode<synchronous>, transform_indices = @transform_5, window_bounds = array<i64: 4, 256, 128>}, {pipeline_mode = #tpu.pipeline_mode<synchronous>, transform_indices = @transform_6, window_bounds = array<i64: 4, 1, 128>}, {pipeline_mode = #tpu.pipeline_mode<synchronous>, transform_indices = @transform_7, window_bounds = array<i64: 896, 128>}, {pipeline_mode = #tpu.pipeline_mode<synchronous>, transform_indices = @transform_8, window_bounds = array<i64: 1, 128>}, {transform_indices = @transform_9, window_bounds = array<i64: 1, 16, 128>}]} {
    %c0 = arith.constant 0 : index
    %c0_0 = arith.constant 0 : index
    %c0_1 = arith.constant 0 : index
    %0 = vector.load %arg1[%c0, %c0_0, %c0_1] : memref<1x16x128xf32, #tpu.memory_space<vmem>>, vector<1x16x128xf32>
    %1 = vector.shape_cast %0 : vector<1x16x128xf32> to vector<16x128xf32>
    %c8 = arith.constant 8 : index
    %c0_2 = arith.constant 0 : index
    %2 = vector.load %arg11[%c8, %c0_2] : memref<32x128xf32, #tpu.memory_space<vmem>>, vector<16x128xf32>
    tpu.vector_store %arg11[%c8, %c0_2], %1 {strides = array<i32>} : memref<32x128xf32, #tpu.memory_space<vmem>>, vector<16x128xf32>,
    %3 = vector.extract_strided_slice %1 {offsets = [1, 0], sizes = [1, 128], strides = [1, 1]} : vector<16x128xf32> to vector<1x128xf32>
    %c7 = arith.constant 7 : index
    %c0_3 = arith.constant 0 : index
    %4 = vector.load %arg11[%c7, %c0_3] : memref<32x128xf32, #tpu.memory_space<vmem>>, vector<1x128xf32>
    tpu.vector_store %arg11[%c7, %c0_3], %3 {strides = array<i32>} : memref<32x128xf32, #tpu.memory_space<vmem>>, vector<1x128xf32>,
    %5 = vector.extract_strided_slice %1 {offsets = [14, 0], sizes = [1, 128], strides = [1, 1]} : vector<16x128xf32> to vector<1x128xf32>
    %c24 = arith.constant 24 : index
    %c0_4 = arith.constant 0 : index
    %6 = vector.load %arg11[%c24, %c0_4] : memref<32x128xf32, #tpu.memory_space<vmem>>, vector<1x128xf32>
    tpu.vector_store %arg11[%c24, %c0_4], %5 {strides = array<i32>} : memref<32x128xf32, #tpu.memory_space<vmem>>, vector<1x128xf32>,
    %7 = vector.extract_strided_slice %1 {offsets = [2, 0], sizes = [1, 128], strides = [1, 1]} : vector<16x128xf32> to vector<1x128xf32>
    %c6 = arith.constant 6 : index
    %c0_5 = arith.constant 0 : index
    %8 = vector.load %arg11[%c6, %c0_5] : memref<32x128xf32, #tpu.memory_space<vmem>>, vector<1x128xf32>
    tpu.vector_store %arg11[%c6, %c0_5], %7 {strides = array<i32>} : memref<32x128xf32, #tpu.memory_space<vmem>>, vector<1x128xf32>,
    %9 = vector.extract_strided_slice %1 {offsets = [13, 0], sizes = [1, 128], strides = [1, 1]} : vector<16x128xf32> to vector<1x128xf32>
    %c25 = arith.constant 25 : index
    %c0_6 = arith.constant 0 : index
    %10 = vector.load %arg11[%c25, %c0_6] : memref<32x128xf32, #tpu.memory_space<vmem>>, vector<1x128xf32>
    tpu.vector_store %arg11[%c25, %c0_6], %9 {strides = array<i32>} : memref<32x128xf32, #tpu.memory_space<vmem>>, vector<1x128xf32>,
    %11 = vector.extract_strided_slice %1 {offsets = [3, 0], sizes = [1, 128], strides = [1, 1]} : vector<16x128xf32> to vector<1x128xf32>
    %c5 = arith.constant 5 : index
    %c0_7 = arith.constant 0 : index
    %12 = vector.load %arg11[%c5, %c0_7] : memref<32x128xf32, #tpu.memory_space<vmem>>, vector<1x128xf32>
    tpu.vector_store %arg11[%c5, %c0_7], %11 {strides = array<i32>} : memref<32x128xf32, #tpu.memory_space<vmem>>, vector<1x128xf32>,
    %13 = vector.extract_strided_slice %1 {offsets = [12, 0], sizes = [1, 128], strides = [1, 1]} : vector<16x128xf32> to vector<1x128xf32>
    %c26 = arith.constant 26 : index
    %c0_8 = arith.constant 0 : index
    %14 = vector.load %arg11[%c26, %c0_8] : memref<32x128xf32, #tpu.memory_space<vmem>>, vector<1x128xf32>
    tpu.vector_store %arg11[%c26, %c0_8], %13 {strides = array<i32>} : memref<32x128xf32, #tpu.memory_space<vmem>>, vector<1x128xf32>,
    %c0_9 = arith.constant 0 : index
    %c0_10 = arith.constant 0 : index
    %15 = vector.load %arg2[%c0_9, %c0_10] : memref<896x128xbf16, #tpu.memory_space<vmem>>, vector<896x128xbf16>
    %c0_11 = arith.constant 0 : index
    %c0_12 = arith.constant 0 : index
    %16 = vector.load %arg3[%c0_11, %c0_12] : memref<1x128xf32, #tpu.memory_space<vmem>>, vector<1x128xf32>
    %c5_13 = arith.constant 5 : index
    %c0_14 = arith.constant 0 : index
    %17 = vector.load %arg11[%c5_13, %c0_14] : memref<32x128xf32, #tpu.memory_space<vmem>>, vector<16x128xf32>
    %c6_15 = arith.constant 6 : index
    %c0_16 = arith.constant 0 : index
    %18 = vector.load %arg11[%c6_15, %c0_16] : memref<32x128xf32, #tpu.memory_space<vmem>>, vector<16x128xf32>
    %c7_17 = arith.constant 7 : index
    %c0_18 = arith.constant 0 : index
    %19 = vector.load %arg11[%c7_17, %c0_18] : memref<32x128xf32, #tpu.memory_space<vmem>>, vector<16x128xf32>
    %c8_19 = arith.constant 8 : index
    %c0_20 = arith.constant 0 : index
    %20 = vector.load %arg11[%c8_19, %c0_20] : memref<32x128xf32, #tpu.memory_space<vmem>>, vector<16x128xf32>
    %c9 = arith.constant 9 : index
    %c0_21 = arith.constant 0 : index
    %21 = vector.load %arg11[%c9, %c0_21] : memref<32x128xf32, #tpu.memory_space<vmem>>, vector<16x128xf32>
    %c10 = arith.constant 10 : index
    %c0_22 = arith.constant 0 : index
    %22 = vector.load %arg11[%c10, %c0_22] : memref<32x128xf32, #tpu.memory_space<vmem>>, vector<16x128xf32>
    %c11 = arith.constant 11 : index
    %c0_23 = arith.constant 0 : index
    %23 = vector.load %arg11[%c11, %c0_23] : memref<32x128xf32, #tpu.memory_space<vmem>>, vector<16x128xf32>
    %24 = tpu.concatenate %17, %18, %19, %20, %21, %22, %23 in 1 : vector<16x128xf32>, vector<16x128xf32>, vector<16x128xf32>, vector<16x128xf32>, vector<16x128xf32>, vector<16x128xf32>, vector<16x128xf32> -> vector<16x896xf32>
    %25 = arith.truncf %24 : vector<16x896xf32> to vector<16x896xbf16>
    %cst = arith.constant dense<0.000000e+00> : vector<16x128xf32>
    %26 = tpu.matmul %25, %15, %cst {dimension_numbers = #tpu.dot_dimension_numbers<[1], [0], [0], [1], [0, 0, 1, 1], [], []>} : vector<16x896xbf16>, vector<896x128xbf16>, vector<16x128xf32> -> vector<16x128xf32>
    %27 = vector.broadcast %16 : vector<1x128xf32> to vector<16x128xf32>
    %28 = arith.addf %26, %27 : vector<16x128xf32>
    %cst_24 = arith.constant 0.000000e+00 : f32
    %29 = vector.broadcast %cst_24 : f32 to vector<16x128xf32>
    %30 = arith.cmpf oge, %28, %29 : vector<16x128xf32>
    %cst_25 = arith.constant 2.000000e-01 : f32
    %31 = vector.broadcast %cst_25 : f32 to vector<16x128xf32>
    %32 = arith.mulf %31, %28 : vector<16x128xf32>
    %33 = arith.select %30, %28, %32 : vector<16x128xi1>, vector<16x128xf32>
    %c8_26 = arith.constant 8 : index
    %c0_27 = arith.constant 0 : index
    %34 = vector.load %arg11[%c8_26, %c0_27] : memref<32x128xf32, #tpu.memory_space<vmem>>, vector<16x128xf32>
    tpu.vector_store %arg11[%c8_26, %c0_27], %33 {strides = array<i32>} : memref<32x128xf32, #tpu.memory_space<vmem>>, vector<16x128xf32>,
    %35 = vector.extract_strided_slice %33 {offsets = [1, 0], sizes = [1, 128], strides = [1, 1]} : vector<16x128xf32> to vector<1x128xf32>
    %c7_28 = arith.constant 7 : index
    %c0_29 = arith.constant 0 : index
    %36 = vector.load %arg11[%c7_28, %c0_29] : memref<32x128xf32, #tpu.memory_space<vmem>>, vector<1x128xf32>
    tpu.vector_store %arg11[%c7_28, %c0_29], %35 {strides = array<i32>} : memref<32x128xf32, #tpu.memory_space<vmem>>, vector<1x128xf32>,
    %37 = vector.extract_strided_slice %33 {offsets = [14, 0], sizes = [1, 128], strides = [1, 1]} : vector<16x128xf32> to vector<1x128xf32>
    %c24_30 = arith.constant 24 : index
    %c0_31 = arith.constant 0 : index
    %38 = vector.load %arg11[%c24_30, %c0_31] : memref<32x128xf32, #tpu.memory_space<vmem>>, vector<1x128xf32>
    tpu.vector_store %arg11[%c24_30, %c0_31], %37 {strides = array<i32>} : memref<32x128xf32, #tpu.memory_space<vmem>>, vector<1x128xf32>,
    %c0_32 = arith.constant 0 : index
    %c0_33 = arith.constant 0 : index
    %c0_34 = arith.constant 0 : index
    %39 = vector.load %arg4[%c0_32, %c0_33, %c0_34] : memref<4x384x128xbf16, #tpu.memory_space<vmem>>, vector<1x384x128xbf16>
    %40 = vector.shape_cast %39 : vector<1x384x128xbf16> to vector<384x128xbf16>
    %c0_35 = arith.constant 0 : index
    %c0_36 = arith.constant 0 : index
    %c0_37 = arith.constant 0 : index
    %41 = vector.load %arg5[%c0_35, %c0_36, %c0_37] : memref<4x1x128xf32, #tpu.memory_space<vmem>>, vector<1x1x128xf32>
    %42 = vector.shape_cast %41 : vector<1x1x128xf32> to vector<1x128xf32>
    %c7_38 = arith.constant 7 : index
    %c0_39 = arith.constant 0 : index
    %43 = vector.load %arg11[%c7_38, %c0_39] : memref<32x128xf32, #tpu.memory_space<vmem>>, vector<16x128xf32>
    %c8_40 = arith.constant 8 : index
    %c0_41 = arith.constant 0 : index
    %44 = vector.load %arg11[%c8_40, %c0_41] : memref<32x128xf32, #tpu.memory_space<vmem>>, vector<16x128xf32>
    %c9_42 = arith.constant 9 : index
    %c0_43 = arith.constant 0 : index
    %45 = vector.load %arg11[%c9_42, %c0_43] : memref<32x128xf32, #tpu.memory_space<vmem>>, vector<16x128xf32>
    %46 = tpu.concatenate %43, %44, %45 in 1 : vector<16x128xf32>, vector<16x128xf32>, vector<16x128xf32> -> vector<16x384xf32>
    %47 = arith.truncf %46 : vector<16x384xf32> to vector<16x384xbf16>
    %cst_44 = arith.constant dense<0.000000e+00> : vector<16x128xf32>
    %48 = tpu.matmul %47, %40, %cst_44 {dimension_numbers = #tpu.dot_dimension_numbers<[1], [0], [0], [1], [0, 0, 1, 1], [], []>} : vector<16x384xbf16>, vector<384x128xbf16>, vector<16x128xf32> -> vector<16x128xf32>
    %49 = vector.broadcast %42 : vector<1x128xf32> to vector<16x128xf32>
    %50 = arith.addf %48, %49 : vector<16x128xf32>
    %cst_45 = arith.constant 0.000000e+00 : f32
    %51 = vector.broadcast %cst_45 : f32 to vector<16x128xf32>
    %52 = arith.cmpf oge, %50, %51 : vector<16x128xf32>
    %cst_46 = arith.constant 2.000000e-01 : f32
    %53 = vector.broadcast %cst_46 : f32 to vector<16x128xf32>
    %54 = arith.mulf %53, %50 : vector<16x128xf32>
    %55 = arith.select %52, %50, %54 : vector<16x128xi1>, vector<16x128xf32>
    %56 = tpu.concatenate %55, %28 in 1 : vector<16x128xf32>, vector<16x128xf32> -> vector<16x256xf32>
    %57 = arith.truncf %56 : vector<16x256xf32> to vector<16x256xbf16>
    %c0_47 = arith.constant 0 : index
    %c0_48 = arith.constant 0 : index
    %c0_49 = arith.constant 0 : index
    %58 = vector.load %arg6[%c0_47, %c0_48, %c0_49] : memref<4x256x128xbf16, #tpu.memory_space<vmem>>, vector<1x256x128xbf16>
    %59 = vector.shape_cast %58 : vector<1x256x128xbf16> to vector<256x128xbf16>
    %cst_50 = arith.constant dense<0.000000e+00> : vector<16x128xf32>
    %60 = tpu.matmul %57, %59, %cst_50 {dimension_numbers = #tpu.dot_dimension_numbers<[1], [0], [0], [1], [0, 0, 1, 1], [], []>} : vector<16x256xbf16>, vector<256x128xbf16>, vector<16x128xf32> -> vector<16x128xf32>
    %c0_51 = arith.constant 0 : index
    %c0_52 = arith.constant 0 : index
    %c0_53 = arith.constant 0 : index
    %61 = vector.load %arg7[%c0_51, %c0_52, %c0_53] : memref<4x1x128xf32, #tpu.memory_space<vmem>>, vector<1x1x128xf32>
    %62 = vector.shape_cast %61 : vector<1x1x128xf32> to vector<1x128xf32>
    %63 = vector.broadcast %62 : vector<1x128xf32> to vector<16x128xf32>
    %64 = arith.addf %60, %63 : vector<16x128xf32>
    %cst_54 = arith.constant 0.000000e+00 : f32
    %65 = vector.broadcast %cst_54 : f32 to vector<16x128xf32>
    %66 = arith.cmpf oge, %64, %65 : vector<16x128xf32>
    %cst_55 = arith.constant 2.000000e-01 : f32
    %67 = vector.broadcast %cst_55 : f32 to vector<16x128xf32>
    %68 = arith.mulf %67, %64 : vector<16x128xf32>
    %69 = arith.select %66, %64, %68 : vector<16x128xi1>, vector<16x128xf32>
    %c8_56 = arith.constant 8 : index
    %c0_57 = arith.constant 0 : index
    %70 = vector.load %arg11[%c8_56, %c0_57] : memref<32x128xf32, #tpu.memory_space<vmem>>, vector<16x128xf32>
    tpu.vector_store %arg11[%c8_56, %c0_57], %69 {strides = array<i32>} : memref<32x128xf32, #tpu.memory_space<vmem>>, vector<16x128xf32>,
    %71 = vector.extract_strided_slice %69 {offsets = [1, 0], sizes = [1, 128], strides = [1, 1]} : vector<16x128xf32> to vector<1x128xf32>
    %c7_58 = arith.constant 7 : index
    %c0_59 = arith.constant 0 : index
    %72 = vector.load %arg11[%c7_58, %c0_59] : memref<32x128xf32, #tpu.memory_space<vmem>>, vector<1x128xf32>
    tpu.vector_store %arg11[%c7_58, %c0_59], %71 {strides = array<i32>} : memref<32x128xf32, #tpu.memory_space<vmem>>, vector<1x128xf32>,
    %73 = vector.extract_strided_slice %69 {offsets = [14, 0], sizes = [1, 128], strides = [1, 1]} : vector<16x128xf32> to vector<1x128xf32>
    %c24_60 = arith.constant 24 : index
    %c0_61 = arith.constant 0 : index
    %74 = vector.load %arg11[%c24_60, %c0_61] : memref<32x128xf32, #tpu.memory_space<vmem>>, vector<1x128xf32>
    tpu.vector_store %arg11[%c24_60, %c0_61], %73 {strides = array<i32>} : memref<32x128xf32, #tpu.memory_space<vmem>>, vector<1x128xf32>,
    %75 = vector.extract_strided_slice %69 {offsets = [2, 0], sizes = [1, 128], strides = [1, 1]} : vector<16x128xf32> to vector<1x128xf32>
    %c6_62 = arith.constant 6 : index
    %c0_63 = arith.constant 0 : index
    %76 = vector.load %arg11[%c6_62, %c0_63] : memref<32x128xf32, #tpu.memory_space<vmem>>, vector<1x128xf32>
    tpu.vector_store %arg11[%c6_62, %c0_63], %75 {strides = array<i32>} : memref<32x128xf32, #tpu.memory_space<vmem>>, vector<1x128xf32>,
    %77 = vector.extract_strided_slice %69 {offsets = [13, 0], sizes = [1, 128], strides = [1, 1]} : vector<16x128xf32> to vector<1x128xf32>
    %c25_64 = arith.constant 25 : index
    %c0_65 = arith.constant 0 : index
    %78 = vector.load %arg11[%c25_64, %c0_65] : memref<32x128xf32, #tpu.memory_space<vmem>>, vector<1x128xf32>
    tpu.vector_store %arg11[%c25_64, %c0_65], %77 {strides = array<i32>} : memref<32x128xf32, #tpu.memory_space<vmem>>, vector<1x128xf32>,
    %c1 = arith.constant 1 : index
    %c0_66 = arith.constant 0 : index
    %c0_67 = arith.constant 0 : index
    %79 = vector.load %arg4[%c1, %c0_66, %c0_67] : memref<4x384x128xbf16, #tpu.memory_space<vmem>>, vector<1x384x128xbf16>
    %80 = vector.shape_cast %79 : vector<1x384x128xbf16> to vector<384x128xbf16>
    %c1_68 = arith.constant 1 : index
    %c0_69 = arith.constant 0 : index
    %c0_70 = arith.constant 0 : index
    %81 = vector.load %arg5[%c1_68, %c0_69, %c0_70] : memref<4x1x128xf32, #tpu.memory_space<vmem>>, vector<1x1x128xf32>
    %82 = vector.shape_cast %81 : vector<1x1x128xf32> to vector<1x128xf32>
    %c6_71 = arith.constant 6 : index
    %c0_72 = arith.constant 0 : index
    %83 = vector.load %arg11[%c6_71, %c0_72] : memref<32x128xf32, #tpu.memory_space<vmem>>, vector<16x128xf32>
    %c8_73 = arith.constant 8 : index
    %c0_74 = arith.constant 0 : index
    %84 = vector.load %arg11[%c8_73, %c0_74] : memref<32x128xf32, #tpu.memory_space<vmem>>, vector<16x128xf32>
    %c10_75 = arith.constant 10 : index
    %c0_76 = arith.constant 0 : index
    %85 = vector.load %arg11[%c10_75, %c0_76] : memref<32x128xf32, #tpu.memory_space<vmem>>, vector<16x128xf32>
    %86 = tpu.concatenate %83, %84, %85 in 1 : vector<16x128xf32>, vector<16x128xf32>, vector<16x128xf32> -> vector<16x384xf32>
    %87 = arith.truncf %86 : vector<16x384xf32> to vector<16x384xbf16>
    %cst_77 = arith.constant dense<0.000000e+00> : vector<16x128xf32>
    %88 = tpu.matmul %87, %80, %cst_77 {dimension_numbers = #tpu.dot_dimension_numbers<[1], [0], [0], [1], [0, 0, 1, 1], [], []>} : vector<16x384xbf16>, vector<384x128xbf16>, vector<16x128xf32> -> vector<16x128xf32>
    %89 = vector.broadcast %82 : vector<1x128xf32> to vector<16x128xf32>
    %90 = arith.addf %88, %89 : vector<16x128xf32>
    %cst_78 = arith.constant 0.000000e+00 : f32
    %91 = vector.broadcast %cst_78 : f32 to vector<16x128xf32>
    %92 = arith.cmpf oge, %90, %91 : vector<16x128xf32>
    %cst_79 = arith.constant 2.000000e-01 : f32
    %93 = vector.broadcast %cst_79 : f32 to vector<16x128xf32>
    %94 = arith.mulf %93, %90 : vector<16x128xf32>
    %95 = arith.select %92, %90, %94 : vector<16x128xi1>, vector<16x128xf32>
    %96 = tpu.concatenate %95, %64 in 1 : vector<16x128xf32>, vector<16x128xf32> -> vector<16x256xf32>
    %97 = arith.truncf %96 : vector<16x256xf32> to vector<16x256xbf16>
    %c1_80 = arith.constant 1 : index
    %c0_81 = arith.constant 0 : index
    %c0_82 = arith.constant 0 : index
    %98 = vector.load %arg6[%c1_80, %c0_81, %c0_82] : memref<4x256x128xbf16, #tpu.memory_space<vmem>>, vector<1x256x128xbf16>
    %99 = vector.shape_cast %98 : vector<1x256x128xbf16> to vector<256x128xbf16>
    %cst_83 = arith.constant dense<0.000000e+00> : vector<16x128xf32>
    %100 = tpu.matmul %97, %99, %cst_83 {dimension_numbers = #tpu.dot_dimension_numbers<[1], [0], [0], [1], [0, 0, 1, 1], [], []>} : vector<16x256xbf16>, vector<256x128xbf16>, vector<16x128xf32> -> vector<16x128xf32>
    %c1_84 = arith.constant 1 : index
    %c0_85 = arith.constant 0 : index
    %c0_86 = arith.constant 0 : index
    %101 = vector.load %arg7[%c1_84, %c0_85, %c0_86] : memref<4x1x128xf32, #tpu.memory_space<vmem>>, vector<1x1x128xf32>
    %102 = vector.shape_cast %101 : vector<1x1x128xf32> to vector<1x128xf32>
    %103 = vector.broadcast %102 : vector<1x128xf32> to vector<16x128xf32>
    %104 = arith.addf %100, %103 : vector<16x128xf32>
    %cst_87 = arith.constant 0.000000e+00 : f32
    %105 = vector.broadcast %cst_87 : f32 to vector<16x128xf32>
    %106 = arith.cmpf oge, %104, %105 : vector<16x128xf32>
    %cst_88 = arith.constant 2.000000e-01 : f32
    %107 = vector.broadcast %cst_88 : f32 to vector<16x128xf32>
    %108 = arith.mulf %107, %104 : vector<16x128xf32>
    %109 = arith.select %106, %104, %108 : vector<16x128xi1>, vector<16x128xf32>
    %c8_89 = arith.constant 8 : index
    %c0_90 = arith.constant 0 : index
    %110 = vector.load %arg11[%c8_89, %c0_90] : memref<32x128xf32, #tpu.memory_space<vmem>>, vector<16x128xf32>
    tpu.vector_store %arg11[%c8_89, %c0_90], %109 {strides = array<i32>} : memref<32x128xf32, #tpu.memory_space<vmem>>, vector<16x128xf32>,
    %111 = vector.extract_strided_slice %109 {offsets = [1, 0], sizes = [1, 128], strides = [1, 1]} : vector<16x128xf32> to vector<1x128xf32>
    %c7_91 = arith.constant 7 : index
    %c0_92 = arith.constant 0 : index
    %112 = vector.load %arg11[%c7_91, %c0_92] : memref<32x128xf32, #tpu.memory_space<vmem>>, vector<1x128xf32>
    tpu.vector_store %arg11[%c7_91, %c0_92], %111 {strides = array<i32>} : memref<32x128xf32, #tpu.memory_space<vmem>>, vector<1x128xf32>,
    %113 = vector.extract_strided_slice %109 {offsets = [14, 0], sizes = [1, 128], strides = [1, 1]} : vector<16x128xf32> to vector<1x128xf32>
    %c24_93 = arith.constant 24 : index
    %c0_94 = arith.constant 0 : index
    %114 = vector.load %arg11[%c24_93, %c0_94] : memref<32x128xf32, #tpu.memory_space<vmem>>, vector<1x128xf32>
    tpu.vector_store %arg11[%c24_93, %c0_94], %113 {strides = array<i32>} : memref<32x128xf32, #tpu.memory_space<vmem>>, vector<1x128xf32>,
    %115 = vector.extract_strided_slice %109 {offsets = [2, 0], sizes = [1, 128], strides = [1, 1]} : vector<16x128xf32> to vector<1x128xf32>
    %c6_95 = arith.constant 6 : index
    %c0_96 = arith.constant 0 : index
    %116 = vector.load %arg11[%c6_95, %c0_96] : memref<32x128xf32, #tpu.memory_space<vmem>>, vector<1x128xf32>
    tpu.vector_store %arg11[%c6_95, %c0_96], %115 {strides = array<i32>} : memref<32x128xf32, #tpu.memory_space<vmem>>, vector<1x128xf32>,
    %117 = vector.extract_strided_slice %109 {offsets = [13, 0], sizes = [1, 128], strides = [1, 1]} : vector<16x128xf32> to vector<1x128xf32>
    %c25_97 = arith.constant 25 : index
    %c0_98 = arith.constant 0 : index
    %118 = vector.load %arg11[%c25_97, %c0_98] : memref<32x128xf32, #tpu.memory_space<vmem>>, vector<1x128xf32>
    tpu.vector_store %arg11[%c25_97, %c0_98], %117 {strides = array<i32>} : memref<32x128xf32, #tpu.memory_space<vmem>>, vector<1x128xf32>,
    %119 = vector.extract_strided_slice %109 {offsets = [3, 0], sizes = [1, 128], strides = [1, 1]} : vector<16x128xf32> to vector<1x128xf32>
    %c5_99 = arith.constant 5 : index
    %c0_100 = arith.constant 0 : index
    %120 = vector.load %arg11[%c5_99, %c0_100] : memref<32x128xf32, #tpu.memory_space<vmem>>, vector<1x128xf32>
    tpu.vector_store %arg11[%c5_99, %c0_100], %119 {strides = array<i32>} : memref<32x128xf32, #tpu.memory_space<vmem>>, vector<1x128xf32>,
    %121 = vector.extract_strided_slice %109 {offsets = [12, 0], sizes = [1, 128], strides = [1, 1]} : vector<16x128xf32> to vector<1x128xf32>
    %c26_101 = arith.constant 26 : index
    %c0_102 = arith.constant 0 : index
    %122 = vector.load %arg11[%c26_101, %c0_102] : memref<32x128xf32, #tpu.memory_space<vmem>>, vector<1x128xf32>
    tpu.vector_store %arg11[%c26_101, %c0_102], %121 {strides = array<i32>} : memref<32x128xf32, #tpu.memory_space<vmem>>, vector<1x128xf32>,
    %123 = vector.extract_strided_slice %109 {offsets = [4, 0], sizes = [1, 128], strides = [1, 1]} : vector<16x128xf32> to vector<1x128xf32>
    %c4 = arith.constant 4 : index
    %c0_103 = arith.constant 0 : index
    %124 = vector.load %arg11[%c4, %c0_103] : memref<32x128xf32, #tpu.memory_space<vmem>>, vector<1x128xf32>
    tpu.vector_store %arg11[%c4, %c0_103], %123 {strides = array<i32>} : memref<32x128xf32, #tpu.memory_space<vmem>>, vector<1x128xf32>,
    %125 = vector.extract_strided_slice %109 {offsets = [11, 0], sizes = [1, 128], strides = [1, 1]} : vector<16x128xf32> to vector<1x128xf32>
    %c27 = arith.constant 27 : index
    %c0_104 = arith.constant 0 : index
    %126 = vector.load %arg11[%c27, %c0_104] : memref<32x128xf32, #tpu.memory_space<vmem>>, vector<1x128xf32>
    tpu.vector_store %arg11[%c27, %c0_104], %125 {strides = array<i32>} : memref<32x128xf32, #tpu.memory_space<vmem>>, vector<1x128xf32>,
    %c2 = arith.constant 2 : index
    %c0_105 = arith.constant 0 : index
    %c0_106 = arith.constant 0 : index
    %127 = vector.load %arg4[%c2, %c0_105, %c0_106] : memref<4x384x128xbf16, #tpu.memory_space<vmem>>, vector<1x384x128xbf16>
    %128 = vector.shape_cast %127 : vector<1x384x128xbf16> to vector<384x128xbf16>
    %c2_107 = arith.constant 2 : index
    %c0_108 = arith.constant 0 : index
    %c0_109 = arith.constant 0 : index
    %129 = vector.load %arg5[%c2_107, %c0_108, %c0_109] : memref<4x1x128xf32, #tpu.memory_space<vmem>>, vector<1x1x128xf32>
    %130 = vector.shape_cast %129 : vector<1x1x128xf32> to vector<1x128xf32>
    %c4_110 = arith.constant 4 : index
    %c0_111 = arith.constant 0 : index
    %131 = vector.load %arg11[%c4_110, %c0_111] : memref<32x128xf32, #tpu.memory_space<vmem>>, vector<16x128xf32>
    %c8_112 = arith.constant 8 : index
    %c0_113 = arith.constant 0 : index
    %132 = vector.load %arg11[%c8_112, %c0_113] : memref<32x128xf32, #tpu.memory_space<vmem>>, vector<16x128xf32>
    %c12 = arith.constant 12 : index
    %c0_114 = arith.constant 0 : index
    %133 = vector.load %arg11[%c12, %c0_114] : memref<32x128xf32, #tpu.memory_space<vmem>>, vector<16x128xf32>
    %134 = tpu.concatenate %131, %132, %133 in 1 : vector<16x128xf32>, vector<16x128xf32>, vector<16x128xf32> -> vector<16x384xf32>
    %135 = arith.truncf %134 : vector<16x384xf32> to vector<16x384xbf16>
    %cst_115 = arith.constant dense<0.000000e+00> : vector<16x128xf32>
    %136 = tpu.matmul %135, %128, %cst_115 {dimension_numbers = #tpu.dot_dimension_numbers<[1], [0], [0], [1], [0, 0, 1, 1], [], []>} : vector<16x384xbf16>, vector<384x128xbf16>, vector<16x128xf32> -> vector<16x128xf32>
    %137 = vector.broadcast %130 : vector<1x128xf32> to vector<16x128xf32>
    %138 = arith.addf %136, %137 : vector<16x128xf32>
    %cst_116 = arith.constant 0.000000e+00 : f32
    %139 = vector.broadcast %cst_116 : f32 to vector<16x128xf32>
    %140 = arith.cmpf oge, %138, %139 : vector<16x128xf32>
    %cst_117 = arith.constant 2.000000e-01 : f32
    %141 = vector.broadcast %cst_117 : f32 to vector<16x128xf32>
    %142 = arith.mulf %141, %138 : vector<16x128xf32>
    %143 = arith.select %140, %138, %142 : vector<16x128xi1>, vector<16x128xf32>
    %144 = tpu.concatenate %143, %104 in 1 : vector<16x128xf32>, vector<16x128xf32> -> vector<16x256xf32>
    %145 = arith.truncf %144 : vector<16x256xf32> to vector<16x256xbf16>
    %c2_118 = arith.constant 2 : index
    %c0_119 = arith.constant 0 : index
    %c0_120 = arith.constant 0 : index
    %146 = vector.load %arg6[%c2_118, %c0_119, %c0_120] : memref<4x256x128xbf16, #tpu.memory_space<vmem>>, vector<1x256x128xbf16>
    %147 = vector.shape_cast %146 : vector<1x256x128xbf16> to vector<256x128xbf16>
    %cst_121 = arith.constant dense<0.000000e+00> : vector<16x128xf32>
    %148 = tpu.matmul %145, %147, %cst_121 {dimension_numbers = #tpu.dot_dimension_numbers<[1], [0], [0], [1], [0, 0, 1, 1], [], []>} : vector<16x256xbf16>, vector<256x128xbf16>, vector<16x128xf32> -> vector<16x128xf32>
    %c2_122 = arith.constant 2 : index
    %c0_123 = arith.constant 0 : index
    %c0_124 = arith.constant 0 : index
    %149 = vector.load %arg7[%c2_122, %c0_123, %c0_124] : memref<4x1x128xf32, #tpu.memory_space<vmem>>, vector<1x1x128xf32>
    %150 = vector.shape_cast %149 : vector<1x1x128xf32> to vector<1x128xf32>
    %151 = vector.broadcast %150 : vector<1x128xf32> to vector<16x128xf32>
    %152 = arith.addf %148, %151 : vector<16x128xf32>
    %cst_125 = arith.constant 0.000000e+00 : f32
    %153 = vector.broadcast %cst_125 : f32 to vector<16x128xf32>
    %154 = arith.cmpf oge, %152, %153 : vector<16x128xf32>
    %cst_126 = arith.constant 2.000000e-01 : f32
    %155 = vector.broadcast %cst_126 : f32 to vector<16x128xf32>
    %156 = arith.mulf %155, %152 : vector<16x128xf32>
    %157 = arith.select %154, %152, %156 : vector<16x128xi1>, vector<16x128xf32>
    %c8_127 = arith.constant 8 : index
    %c0_128 = arith.constant 0 : index
    %158 = vector.load %arg11[%c8_127, %c0_128] : memref<32x128xf32, #tpu.memory_space<vmem>>, vector<16x128xf32>
    tpu.vector_store %arg11[%c8_127, %c0_128], %157 {strides = array<i32>} : memref<32x128xf32, #tpu.memory_space<vmem>>, vector<16x128xf32>,
    %159 = vector.extract_strided_slice %157 {offsets = [1, 0], sizes = [1, 128], strides = [1, 1]} : vector<16x128xf32> to vector<1x128xf32>
    %c7_129 = arith.constant 7 : index
    %c0_130 = arith.constant 0 : index
    %160 = vector.load %arg11[%c7_129, %c0_130] : memref<32x128xf32, #tpu.memory_space<vmem>>, vector<1x128xf32>
    tpu.vector_store %arg11[%c7_129, %c0_130], %159 {strides = array<i32>} : memref<32x128xf32, #tpu.memory_space<vmem>>, vector<1x128xf32>,
    %161 = vector.extract_strided_slice %157 {offsets = [14, 0], sizes = [1, 128], strides = [1, 1]} : vector<16x128xf32> to vector<1x128xf32>
    %c24_131 = arith.constant 24 : index
    %c0_132 = arith.constant 0 : index
    %162 = vector.load %arg11[%c24_131, %c0_132] : memref<32x128xf32, #tpu.memory_space<vmem>>, vector<1x128xf32>
    tpu.vector_store %arg11[%c24_131, %c0_132], %161 {strides = array<i32>} : memref<32x128xf32, #tpu.memory_space<vmem>>, vector<1x128xf32>,
    %163 = vector.extract_strided_slice %157 {offsets = [2, 0], sizes = [1, 128], strides = [1, 1]} : vector<16x128xf32> to vector<1x128xf32>
    %c6_133 = arith.constant 6 : index
    %c0_134 = arith.constant 0 : index
    %164 = vector.load %arg11[%c6_133, %c0_134] : memref<32x128xf32, #tpu.memory_space<vmem>>, vector<1x128xf32>
    tpu.vector_store %arg11[%c6_133, %c0_134], %163 {strides = array<i32>} : memref<32x128xf32, #tpu.memory_space<vmem>>, vector<1x128xf32>,
    %165 = vector.extract_strided_slice %157 {offsets = [13, 0], sizes = [1, 128], strides = [1, 1]} : vector<16x128xf32> to vector<1x128xf32>
    %c25_135 = arith.constant 25 : index
    %c0_136 = arith.constant 0 : index
    %166 = vector.load %arg11[%c25_135, %c0_136] : memref<32x128xf32, #tpu.memory_space<vmem>>, vector<1x128xf32>
    tpu.vector_store %arg11[%c25_135, %c0_136], %165 {strides = array<i32>} : memref<32x128xf32, #tpu.memory_space<vmem>>, vector<1x128xf32>,
    %167 = vector.extract_strided_slice %157 {offsets = [3, 0], sizes = [1, 128], strides = [1, 1]} : vector<16x128xf32> to vector<1x128xf32>
    %c5_137 = arith.constant 5 : index
    %c0_138 = arith.constant 0 : index
    %168 = vector.load %arg11[%c5_137, %c0_138] : memref<32x128xf32, #tpu.memory_space<vmem>>, vector<1x128xf32>
    tpu.vector_store %arg11[%c5_137, %c0_138], %167 {strides = array<i32>} : memref<32x128xf32, #tpu.memory_space<vmem>>, vector<1x128xf32>,
    %169 = vector.extract_strided_slice %157 {offsets = [12, 0], sizes = [1, 128], strides = [1, 1]} : vector<16x128xf32> to vector<1x128xf32>
    %c26_139 = arith.constant 26 : index
    %c0_140 = arith.constant 0 : index
    %170 = vector.load %arg11[%c26_139, %c0_140] : memref<32x128xf32, #tpu.memory_space<vmem>>, vector<1x128xf32>
    tpu.vector_store %arg11[%c26_139, %c0_140], %169 {strides = array<i32>} : memref<32x128xf32, #tpu.memory_space<vmem>>, vector<1x128xf32>,
    %171 = vector.extract_strided_slice %157 {offsets = [4, 0], sizes = [1, 128], strides = [1, 1]} : vector<16x128xf32> to vector<1x128xf32>
    %c4_141 = arith.constant 4 : index
    %c0_142 = arith.constant 0 : index
    %172 = vector.load %arg11[%c4_141, %c0_142] : memref<32x128xf32, #tpu.memory_space<vmem>>, vector<1x128xf32>
    tpu.vector_store %arg11[%c4_141, %c0_142], %171 {strides = array<i32>} : memref<32x128xf32, #tpu.memory_space<vmem>>, vector<1x128xf32>,
    %173 = vector.extract_strided_slice %157 {offsets = [11, 0], sizes = [1, 128], strides = [1, 1]} : vector<16x128xf32> to vector<1x128xf32>
    %c27_143 = arith.constant 27 : index
    %c0_144 = arith.constant 0 : index
    %174 = vector.load %arg11[%c27_143, %c0_144] : memref<32x128xf32, #tpu.memory_space<vmem>>, vector<1x128xf32>
    tpu.vector_store %arg11[%c27_143, %c0_144], %173 {strides = array<i32>} : memref<32x128xf32, #tpu.memory_space<vmem>>, vector<1x128xf32>,
    %175 = vector.extract_strided_slice %157 {offsets = [5, 0], sizes = [1, 128], strides = [1, 1]} : vector<16x128xf32> to vector<1x128xf32>
    %c3 = arith.constant 3 : index
    %c0_145 = arith.constant 0 : index
    %176 = vector.load %arg11[%c3, %c0_145] : memref<32x128xf32, #tpu.memory_space<vmem>>, vector<1x128xf32>
    tpu.vector_store %arg11[%c3, %c0_145], %175 {strides = array<i32>} : memref<32x128xf32, #tpu.memory_space<vmem>>, vector<1x128xf32>,
    %177 = vector.extract_strided_slice %157 {offsets = [10, 0], sizes = [1, 128], strides = [1, 1]} : vector<16x128xf32> to vector<1x128xf32>
    %c28 = arith.constant 28 : index
    %c0_146 = arith.constant 0 : index
    %178 = vector.load %arg11[%c28, %c0_146] : memref<32x128xf32, #tpu.memory_space<vmem>>, vector<1x128xf32>
    tpu.vector_store %arg11[%c28, %c0_146], %177 {strides = array<i32>} : memref<32x128xf32, #tpu.memory_space<vmem>>, vector<1x128xf32>,
    %179 = vector.extract_strided_slice %157 {offsets = [6, 0], sizes = [1, 128], strides = [1, 1]} : vector<16x128xf32> to vector<1x128xf32>
    %c2_147 = arith.constant 2 : index
    %c0_148 = arith.constant 0 : index
    %180 = vector.load %arg11[%c2_147, %c0_148] : memref<32x128xf32, #tpu.memory_space<vmem>>, vector<1x128xf32>
    tpu.vector_store %arg11[%c2_147, %c0_148], %179 {strides = array<i32>} : memref<32x128xf32, #tpu.memory_space<vmem>>, vector<1x128xf32>,
    %181 = vector.extract_strided_slice %157 {offsets = [9, 0], sizes = [1, 128], strides = [1, 1]} : vector<16x128xf32> to vector<1x128xf32>
    %c29 = arith.constant 29 : index
    %c0_149 = arith.constant 0 : index
    %182 = vector.load %arg11[%c29, %c0_149] : memref<32x128xf32, #tpu.memory_space<vmem>>, vector<1x128xf32>
    tpu.vector_store %arg11[%c29, %c0_149], %181 {strides = array<i32>} : memref<32x128xf32, #tpu.memory_space<vmem>>, vector<1x128xf32>,
    %183 = vector.extract_strided_slice %157 {offsets = [7, 0], sizes = [1, 128], strides = [1, 1]} : vector<16x128xf32> to vector<1x128xf32>
    %c1_150 = arith.constant 1 : index
    %c0_151 = arith.constant 0 : index
    %184 = vector.load %arg11[%c1_150, %c0_151] : memref<32x128xf32, #tpu.memory_space<vmem>>, vector<1x128xf32>
    tpu.vector_store %arg11[%c1_150, %c0_151], %183 {strides = array<i32>} : memref<32x128xf32, #tpu.memory_space<vmem>>, vector<1x128xf32>,
    %185 = vector.extract_strided_slice %157 {offsets = [8, 0], sizes = [1, 128], strides = [1, 1]} : vector<16x128xf32> to vector<1x128xf32>
    %c30 = arith.constant 30 : index
    %c0_152 = arith.constant 0 : index
    %186 = vector.load %arg11[%c30, %c0_152] : memref<32x128xf32, #tpu.memory_space<vmem>>, vector<1x128xf32>
    tpu.vector_store %arg11[%c30, %c0_152], %185 {strides = array<i32>} : memref<32x128xf32, #tpu.memory_space<vmem>>, vector<1x128xf32>,
    %187 = vector.extract_strided_slice %157 {offsets = [8, 0], sizes = [1, 128], strides = [1, 1]} : vector<16x128xf32> to vector<1x128xf32>
    %c0_153 = arith.constant 0 : index
    %c0_154 = arith.constant 0 : index
    %188 = vector.load %arg11[%c0_153, %c0_154] : memref<32x128xf32, #tpu.memory_space<vmem>>, vector<1x128xf32>
    tpu.vector_store %arg11[%c0_153, %c0_154], %187 {strides = array<i32>} : memref<32x128xf32, #tpu.memory_space<vmem>>, vector<1x128xf32>,
    %189 = vector.extract_strided_slice %157 {offsets = [7, 0], sizes = [1, 128], strides = [1, 1]} : vector<16x128xf32> to vector<1x128xf32>
    %c31 = arith.constant 31 : index
    %c0_155 = arith.constant 0 : index
    %190 = vector.load %arg11[%c31, %c0_155] : memref<32x128xf32, #tpu.memory_space<vmem>>, vector<1x128xf32>
    tpu.vector_store %arg11[%c31, %c0_155], %189 {strides = array<i32>} : memref<32x128xf32, #tpu.memory_space<vmem>>, vector<1x128xf32>,
    %c3_156 = arith.constant 3 : index
    %c0_157 = arith.constant 0 : index
    %c0_158 = arith.constant 0 : index
    %191 = vector.load %arg4[%c3_156, %c0_157, %c0_158] : memref<4x384x128xbf16, #tpu.memory_space<vmem>>, vector<1x384x128xbf16>
    %192 = vector.shape_cast %191 : vector<1x384x128xbf16> to vector<384x128xbf16>
    %c3_159 = arith.constant 3 : index
    %c0_160 = arith.constant 0 : index
    %c0_161 = arith.constant 0 : index
    %193 = vector.load %arg5[%c3_159, %c0_160, %c0_161] : memref<4x1x128xf32, #tpu.memory_space<vmem>>, vector<1x1x128xf32>
    %194 = vector.shape_cast %193 : vector<1x1x128xf32> to vector<1x128xf32>
    %c0_162 = arith.constant 0 : index
    %c0_163 = arith.constant 0 : index
    %195 = vector.load %arg11[%c0_162, %c0_163] : memref<32x128xf32, #tpu.memory_space<vmem>>, vector<16x128xf32>
    %c8_164 = arith.constant 8 : index
    %c0_165 = arith.constant 0 : index
    %196 = vector.load %arg11[%c8_164, %c0_165] : memref<32x128xf32, #tpu.memory_space<vmem>>, vector<16x128xf32>
    %c16 = arith.constant 16 : index
    %c0_166 = arith.constant 0 : index
    %197 = vector.load %arg11[%c16, %c0_166] : memref<32x128xf32, #tpu.memory_space<vmem>>, vector<16x128xf32>
    %198 = tpu.concatenate %195, %196, %197 in 1 : vector<16x128xf32>, vector<16x128xf32>, vector<16x128xf32> -> vector<16x384xf32>
    %199 = arith.truncf %198 : vector<16x384xf32> to vector<16x384xbf16>
    %cst_167 = arith.constant dense<0.000000e+00> : vector<16x128xf32>
    %200 = tpu.matmul %199, %192, %cst_167 {dimension_numbers = #tpu.dot_dimension_numbers<[1], [0], [0], [1], [0, 0, 1, 1], [], []>} : vector<16x384xbf16>, vector<384x128xbf16>, vector<16x128xf32> -> vector<16x128xf32>
    %201 = vector.broadcast %194 : vector<1x128xf32> to vector<16x128xf32>
    %202 = arith.addf %200, %201 : vector<16x128xf32>
    %cst_168 = arith.constant 0.000000e+00 : f32
    %203 = vector.broadcast %cst_168 : f32 to vector<16x128xf32>
    %204 = arith.cmpf oge, %202, %203 : vector<16x128xf32>
    %cst_169 = arith.constant 2.000000e-01 : f32
    %205 = vector.broadcast %cst_169 : f32 to vector<16x128xf32>
    %206 = arith.mulf %205, %202 : vector<16x128xf32>
    %207 = arith.select %204, %202, %206 : vector<16x128xi1>, vector<16x128xf32>
    %208 = tpu.concatenate %207, %152 in 1 : vector<16x128xf32>, vector<16x128xf32> -> vector<16x256xf32>
    %209 = arith.truncf %208 : vector<16x256xf32> to vector<16x256xbf16>
    %c3_170 = arith.constant 3 : index
    %c0_171 = arith.constant 0 : index
    %c0_172 = arith.constant 0 : index
    %210 = vector.load %arg6[%c3_170, %c0_171, %c0_172] : memref<4x256x128xbf16, #tpu.memory_space<vmem>>, vector<1x256x128xbf16>
    %211 = vector.shape_cast %210 : vector<1x256x128xbf16> to vector<256x128xbf16>
    %cst_173 = arith.constant dense<0.000000e+00> : vector<16x128xf32>
    %212 = tpu.matmul %209, %211, %cst_173 {dimension_numbers = #tpu.dot_dimension_numbers<[1], [0], [0], [1], [0, 0, 1, 1], [], []>} : vector<16x256xbf16>, vector<256x128xbf16>, vector<16x128xf32> -> vector<16x128xf32>
    %c3_174 = arith.constant 3 : index
    %c0_175 = arith.constant 0 : index
    %c0_176 = arith.constant 0 : index
    %213 = vector.load %arg7[%c3_174, %c0_175, %c0_176] : memref<4x1x128xf32, #tpu.memory_space<vmem>>, vector<1x1x128xf32>
    %214 = vector.shape_cast %213 : vector<1x1x128xf32> to vector<1x128xf32>
    %215 = vector.broadcast %214 : vector<1x128xf32> to vector<16x128xf32>
    %216 = arith.addf %212, %215 : vector<16x128xf32>
    %cst_177 = arith.constant 0.000000e+00 : f32
    %217 = vector.broadcast %cst_177 : f32 to vector<16x128xf32>
    %218 = arith.cmpf oge, %216, %217 : vector<16x128xf32>
    %cst_178 = arith.constant 2.000000e-01 : f32
    %219 = vector.broadcast %cst_178 : f32 to vector<16x128xf32>
    %220 = arith.mulf %219, %216 : vector<16x128xf32>
    %221 = arith.select %218, %216, %220 : vector<16x128xi1>, vector<16x128xf32>
    %c8_179 = arith.constant 8 : index
    %c0_180 = arith.constant 0 : index
    %222 = vector.load %arg11[%c8_179, %c0_180] : memref<32x128xf32, #tpu.memory_space<vmem>>, vector<16x128xf32>
    tpu.vector_store %arg11[%c8_179, %c0_180], %221 {strides = array<i32>} : memref<32x128xf32, #tpu.memory_space<vmem>>, vector<16x128xf32>,
    %223 = vector.extract_strided_slice %221 {offsets = [1, 0], sizes = [1, 128], strides = [1, 1]} : vector<16x128xf32> to vector<1x128xf32>
    %c7_181 = arith.constant 7 : index
    %c0_182 = arith.constant 0 : index
    %224 = vector.load %arg11[%c7_181, %c0_182] : memref<32x128xf32, #tpu.memory_space<vmem>>, vector<1x128xf32>
    tpu.vector_store %arg11[%c7_181, %c0_182], %223 {strides = array<i32>} : memref<32x128xf32, #tpu.memory_space<vmem>>, vector<1x128xf32>,
    %225 = vector.extract_strided_slice %221 {offsets = [14, 0], sizes = [1, 128], strides = [1, 1]} : vector<16x128xf32> to vector<1x128xf32>
    %c24_183 = arith.constant 24 : index
    %c0_184 = arith.constant 0 : index
    %226 = vector.load %arg11[%c24_183, %c0_184] : memref<32x128xf32, #tpu.memory_space<vmem>>, vector<1x128xf32>
    tpu.vector_store %arg11[%c24_183, %c0_184], %225 {strides = array<i32>} : memref<32x128xf32, #tpu.memory_space<vmem>>, vector<1x128xf32>,
    %227 = vector.extract_strided_slice %221 {offsets = [2, 0], sizes = [1, 128], strides = [1, 1]} : vector<16x128xf32> to vector<1x128xf32>
    %c6_185 = arith.constant 6 : index
    %c0_186 = arith.constant 0 : index
    %228 = vector.load %arg11[%c6_185, %c0_186] : memref<32x128xf32, #tpu.memory_space<vmem>>, vector<1x128xf32>
    tpu.vector_store %arg11[%c6_185, %c0_186], %227 {strides = array<i32>} : memref<32x128xf32, #tpu.memory_space<vmem>>, vector<1x128xf32>,
    %229 = vector.extract_strided_slice %221 {offsets = [13, 0], sizes = [1, 128], strides = [1, 1]} : vector<16x128xf32> to vector<1x128xf32>
    %c25_187 = arith.constant 25 : index
    %c0_188 = arith.constant 0 : index
    %230 = vector.load %arg11[%c25_187, %c0_188] : memref<32x128xf32, #tpu.memory_space<vmem>>, vector<1x128xf32>
    tpu.vector_store %arg11[%c25_187, %c0_188], %229 {strides = array<i32>} : memref<32x128xf32, #tpu.memory_space<vmem>>, vector<1x128xf32>,
    %231 = vector.extract_strided_slice %221 {offsets = [3, 0], sizes = [1, 128], strides = [1, 1]} : vector<16x128xf32> to vector<1x128xf32>
    %c5_189 = arith.constant 5 : index
    %c0_190 = arith.constant 0 : index
    %232 = vector.load %arg11[%c5_189, %c0_190] : memref<32x128xf32, #tpu.memory_space<vmem>>, vector<1x128xf32>
    tpu.vector_store %arg11[%c5_189, %c0_190], %231 {strides = array<i32>} : memref<32x128xf32, #tpu.memory_space<vmem>>, vector<1x128xf32>,
    %233 = vector.extract_strided_slice %221 {offsets = [12, 0], sizes = [1, 128], strides = [1, 1]} : vector<16x128xf32> to vector<1x128xf32>
    %c26_191 = arith.constant 26 : index
    %c0_192 = arith.constant 0 : index
    %234 = vector.load %arg11[%c26_191, %c0_192] : memref<32x128xf32, #tpu.memory_space<vmem>>, vector<1x128xf32>
    tpu.vector_store %arg11[%c26_191, %c0_192], %233 {strides = array<i32>} : memref<32x128xf32, #tpu.memory_space<vmem>>, vector<1x128xf32>,
    %c0_193 = arith.constant 0 : index
    %c0_194 = arith.constant 0 : index
    %235 = vector.load %arg8[%c0_193, %c0_194] : memref<896x128xbf16, #tpu.memory_space<vmem>>, vector<896x128xbf16>
    %c0_195 = arith.constant 0 : index
    %c0_196 = arith.constant 0 : index
    %236 = vector.load %arg9[%c0_195, %c0_196] : memref<1x128xf32, #tpu.memory_space<vmem>>, vector<1x128xf32>
    %c5_197 = arith.constant 5 : index
    %c0_198 = arith.constant 0 : index
    %237 = vector.load %arg11[%c5_197, %c0_198] : memref<32x128xf32, #tpu.memory_space<vmem>>, vector<16x128xf32>
    %c6_199 = arith.constant 6 : index
    %c0_200 = arith.constant 0 : index
    %238 = vector.load %arg11[%c6_199, %c0_200] : memref<32x128xf32, #tpu.memory_space<vmem>>, vector<16x128xf32>
    %c7_201 = arith.constant 7 : index
    %c0_202 = arith.constant 0 : index
    %239 = vector.load %arg11[%c7_201, %c0_202] : memref<32x128xf32, #tpu.memory_space<vmem>>, vector<16x128xf32>
    %c8_203 = arith.constant 8 : index
    %c0_204 = arith.constant 0 : index
    %240 = vector.load %arg11[%c8_203, %c0_204] : memref<32x128xf32, #tpu.memory_space<vmem>>, vector<16x128xf32>
    %c9_205 = arith.constant 9 : index
    %c0_206 = arith.constant 0 : index
    %241 = vector.load %arg11[%c9_205, %c0_206] : memref<32x128xf32, #tpu.memory_space<vmem>>, vector<16x128xf32>
    %c10_207 = arith.constant 10 : index
    %c0_208 = arith.constant 0 : index
    %242 = vector.load %arg11[%c10_207, %c0_208] : memref<32x128xf32, #tpu.memory_space<vmem>>, vector<16x128xf32>
    %c11_209 = arith.constant 11 : index
    %c0_210 = arith.constant 0 : index
    %243 = vector.load %arg11[%c11_209, %c0_210] : memref<32x128xf32, #tpu.memory_space<vmem>>, vector<16x128xf32>
    %244 = tpu.concatenate %237, %238, %239, %240, %241, %242, %243 in 1 : vector<16x128xf32>, vector<16x128xf32>, vector<16x128xf32>, vector<16x128xf32>, vector<16x128xf32>, vector<16x128xf32>, vector<16x128xf32> -> vector<16x896xf32>
    %245 = arith.truncf %244 : vector<16x896xf32> to vector<16x896xbf16>
    %cst_211 = arith.constant dense<0.000000e+00> : vector<16x128xf32>
    %246 = tpu.matmul %245, %235, %cst_211 {dimension_numbers = #tpu.dot_dimension_numbers<[1], [0], [0], [1], [0, 0, 1, 1], [], []>} : vector<16x896xbf16>, vector<896x128xbf16>, vector<16x128xf32> -> vector<16x128xf32>
    %247 = vector.broadcast %236 : vector<1x128xf32> to vector<16x128xf32>
    %248 = arith.addf %246, %247 : vector<16x128xf32>
    %c0_212 = arith.constant 0 : index
    %c0_213 = arith.constant 0 : index
    %c0_214 = arith.constant 0 : index
    %249 = vector.load %arg10[%c0_212, %c0_213, %c0_214] : memref<1x16x128xf32, #tpu.memory_space<vmem>>, vector<1x16x128xf32>
    %250 = vector.shape_cast %249 : vector<1x16x128xf32> to vector<16x128xf32>
    %251 = vector.shape_cast %248 : vector<16x128xf32> to vector<1x16x128xf32>
    tpu.vector_store %arg10[%c0_212, %c0_213, %c0_214], %251 {strides = array<i32>} : memref<1x16x128xf32, #tpu.memory_space<vmem>>, vector<1x16x128xf32>,
    return
  }
  func.func @transform_0(%arg0: i32) -> (i32, i32, i32) {
    %c0_i32 = arith.constant 0 : i32
    %c0_i32_0 = arith.constant 0 : i32
    %c0_i32_1 = arith.constant 0 : i32
    return %arg0, %c0_i32, %c0_i32_0 : i32, i32, i32
  }
  func.func @transform_1(%arg0: i32) -> (i32, i32) {
    %c0_i32 = arith.constant 0 : i32
    %c0_i32_0 = arith.constant 0 : i32
    %c0_i32_1 = arith.constant 0 : i32
    return %c0_i32, %c0_i32_0 : i32, i32
  }
  func.func @transform_2(%arg0: i32) -> (i32, i32) {
    %c0_i32 = arith.constant 0 : i32
    %c0_i32_0 = arith.constant 0 : i32
    %c0_i32_1 = arith.constant 0 : i32
    return %c0_i32, %c0_i32_0 : i32, i32
  }
  func.func @transform_3(%arg0: i32) -> (i32, i32, i32) {
    %c0_i32 = arith.constant 0 : i32
    %c0_i32_0 = arith.constant 0 : i32
    %c0_i32_1 = arith.constant 0 : i32
    %c0_i32_2 = arith.constant 0 : i32
    return %c0_i32, %c0_i32_0, %c0_i32_1 : i32, i32, i32
  }
  func.func @transform_4(%arg0: i32) -> (i32, i32, i32) {
    %c0_i32 = arith.constant 0 : i32
    %c0_i32_0 = arith.constant 0 : i32
    %c0_i32_1 = arith.constant 0 : i32
    %c0_i32_2 = arith.constant 0 : i32
    return %c0_i32, %c0_i32_0, %c0_i32_1 : i32, i32, i32
  }
  func.func @transform_5(%arg0: i32) -> (i32, i32, i32) {
    %c0_i32 = arith.constant 0 : i32
    %c0_i32_0 = arith.constant 0 : i32
    %c0_i32_1 = arith.constant 0 : i32
    %c0_i32_2 = arith.constant 0 : i32
    return %c0_i32, %c0_i32_0, %c0_i32_1 : i32, i32, i32
  }
  func.func @transform_6(%arg0: i32) -> (i32, i32, i32) {
    %c0_i32 = arith.constant 0 : i32
    %c0_i32_0 = arith.constant 0 : i32
    %c0_i32_1 = arith.constant 0 : i32
    %c0_i32_2 = arith.constant 0 : i32
    return %c0_i32, %c0_i32_0, %c0_i32_1 : i32, i32, i32
  }
  func.func @transform_7(%arg0: i32) -> (i32, i32) {
    %c0_i32 = arith.constant 0 : i32
    %c0_i32_0 = arith.constant 0 : i32
    %c0_i32_1 = arith.constant 0 : i32
    return %c0_i32, %c0_i32_0 : i32, i32
  }
  func.func @transform_8(%arg0: i32) -> (i32, i32) {
    %c0_i32 = arith.constant 0 : i32
    %c0_i32_0 = arith.constant 0 : i32
    %c0_i32_1 = arith.constant 0 : i32
    return %c0_i32, %c0_i32_0 : i32, i32
  }
  func.func @transform_9(%arg0: i32) -> (i32, i32, i32) {
    %c0_i32 = arith.constant 0 : i32
    %c0_i32_0 = arith.constant 0 : i32
    %c0_i32_1 = arith.constant 0 : i32
    return %arg0, %c0_i32, %c0_i32_0 : i32, i32, i32
  }
}

</mosaic_0001>

<bundles_post_ra>
// kernel: conv1d_resnet_forward.1
= control target key start
LH: loop header
LB: loop body
LE: loop exit
PB: predicated region body
PF: predicated region fallthrough
CT: control target
= control target key end

     0   :  { %14 = vsyncpa [#allocation4], 0  ;;  %s5269_s0 = inlined_call_operand.vmem [shape: f32[2,16,128], index: 0, kind: input, shape index: {}]   ;;  %s5270_s1 = inlined_call_operand.hbm [shape: bf16[896,128], index: 1, kind: input, shape index: {}]   ;;  %s5271_s2 = inlined_call_operand.vmem [shape: f32[1,128], index: 2, kind: input, shape index: {}]   ;;  %s5272_s3 = inlined_call_operand.hbm [shape: bf16[4,384,128], index: 3, kind: input, shape index: {}]   ;;  %s5273_s4 = inlined_call_operand.vmem [shape: f32[4,1,128], index: 4, kind: input, shape index: {}]   ;;  %s5274_s5 = inlined_call_operand.hbm [shape: bf16[4,256,128], index: 5, kind: input, shape index: {}]   ;;  %s5275_s6 = inlined_call_operand.vmem [shape: f32[4,1,128], index: 6, kind: input, shape index: {}]   ;;  %s5276_s7 = inlined_call_operand.hbm [shape: bf16[896,128], index: 7, kind: input, shape index: {}]   ;;  %s5277_s8 = inlined_call_operand.vmem [shape: f32[1,128], index: 8, kind: input, shape index: {}]   ;;  %s5278_s9 = inlined_call_operand.vmem [shape: f32[2,16,128], index: 9, kind: output, shape index: {}]  }
   0x1   :  { %15 = vsyncpa [#allocation6], 0 }
   0x2   :  { %16 = vsyncpa [#allocation9], 0  ;;  %s5061_s30 = smov 0  }
   0x3 LB: > { %s5067_s10 = sadd.s32 4294967295, %s5001_s30   ;;  %p3765_p0 = scmp.ge.s32.totalorder %s5001_s30, 1  ;;  %s5001_s30 = sphi %s5061_s30, %s22_s30  }
   0x4   : > { %p247_p1 = scmp.lt.s32.totalorder %s5001_s30, 3  ;;  %p4583_p2 = scmp.eq.s32.totalorder %s5067_s10, 0 }
   0x5   : > { %s5003_s12 = smov [#allocation5]   ;;  %s5004_s14 = smov [#allocation3]  }
   0x6   : > { %p5072_p3 = pnand %p3765_p0, %p247_p1  ;;  %s275_s13 = sshll.u32 %s5003_s12, 4  ;;  %s276_s13 = int_to_ptr.vmem [resolvable:$true] %s275_s13 }
   0x7   : > { %s259_s15 = sshll.u32 %s5004_s14, 4  ;;  %s5005_s17 = smov [#allocation7]   ;;  %s5078_s15 = int_to_ptr.vmem [resolvable:$true] %s259_s15 }
   0x8   : > { %p4570_p4 = pneg %p5072_p3  ;;  %s291_s18 = sshll.u32 %s5005_s17, 4  ;;  %s5086_s18 = int_to_ptr.vmem [resolvable:$true] %s291_s18 }
   0x9   : > { %s5006_s19 = smov [#allocation8]   ;;  %s4890_s21 = scalar_lea.vmem %s276_s13, 12288 }
   0xa   : > { %p5082_p5 = pnand %p4583_p2, %p4570_p4  ;;  %s5088_s20 = sshll.u32 %s5006_s19, 4  ;;  %s308_s20 = int_to_ptr.vmem [resolvable:$true] %s5088_s20 }
   0xb   : > { %p4891_p7 = scmp.ne.s32.totalorder %s276_s13, %s4890_s21  ;;  %p4898_p10 = scmp.lt.s32.totalorder %s276_s13, %s276_s13 }
   0xc   : > { %p4881_p6 = pneg %p5082_p5  ;;  %p4899_p11 = scmp.lt.s32.totalorder %s4890_s21, %s4890_s21 }
   0xe   : > { %p4893_p8 = pnand %p4891_p7, %p4881_p6  ;;  %p4900_p12 = por %p4899_p11, %p4898_p10 }
  0x10   : > { %p4894_p9 = pneg %p4893_p8 }
  0x12   : > { %p4901_p13 = pnand %p4900_p12, %p4894_p9 }
  0x14   : > { %4904 = shalt.err (!%p4901_p13)
}
  0x15   : > { %s5007_s22 = smov 64   ;;  %s5008_s23 = smov 4  }
  0x16   : > { %4576 = dma.hbm_to_vmem [thread:$0]  (!%p5082_p5), %s5272_s3, 12288, %s276_s13, [#allocation6], %s5007_s22, %s5007_s22, %s5008_s23  }
  0x17   : > { %s4916_s26 = scalar_lea.vmem %s5078_s15, 7168  ;;  %p4924_p7 = scmp.lt.s32.totalorder %s5078_s15, %s5078_s15 }
  0x18   : > { %p4917_p0 = scmp.ne.s32.totalorder %s5078_s15, %s4916_s26  ;;  %p4925_p8 = scmp.lt.s32.totalorder %s4916_s26, %s4916_s26 }
  0x1a   : > { %p4919_p1 = pnand %p4917_p0, %p4881_p6  ;;  %p4926_p9 = por %p4925_p8, %p4924_p7 }
  0x1c   : > { %p4920_p4 = pneg %p4919_p1 }
  0x1e   : > { %p4927_p10 = pnand %p4926_p9, %p4920_p4 }
  0x20   : > { %4930 = shalt.err (!%p4927_p10)
}
  0x21   : > { %4573 = dma.hbm_to_vmem [thread:$0]  (!%p5082_p5), %s5270_s1, 7168, %s5078_s15, [#allocation4], %s5007_s22, %s5007_s22, %s5008_s23  }
  0x22   : > { %s4942_s29 = scalar_lea.vmem %s5086_s18, 8192  ;;  %p4950_p0 = scmp.lt.s32.totalorder %s5086_s18, %s5086_s18 }
  0x23   : > { %p4943_p11 = scmp.ne.s32.totalorder %s5086_s18, %s4942_s29  ;;  %p4951_p1 = scmp.lt.s32.totalorder %s4942_s29, %s4942_s29 }
  0x25   : > { %p4945_p12 = pnand %p4943_p11, %p4881_p6  ;;  %p4952_p4 = por %p4951_p1, %p4950_p0 }
  0x27   : > { %p4946_p13 = pneg %p4945_p12 }
  0x29   : > { %p4953_p7 = pnand %p4952_p4, %p4946_p13 }
  0x2b   : > { %4956 = shalt.err (!%p4953_p7)
}
  0x2c   : > { %4579 = dma.hbm_to_vmem [thread:$0]  (!%p5082_p5), %s5274_s5, 8192, %s5086_s18, [#allocation6], %s5007_s22, %s5007_s22, %s5008_s23  }
  0x2d   : > { %s4968_s14 = scalar_lea.vmem %s308_s20, 7168  ;;  %p4976_p11 = scmp.lt.s32.totalorder %s308_s20, %s308_s20 }
  0x2e   : > { %p4969_p8 = scmp.ne.s32.totalorder %s308_s20, %s4968_s14  ;;  %p4977_p12 = scmp.lt.s32.totalorder %s4968_s14, %s4968_s14 }
  0x30   : > { %p4971_p9 = pnand %p4969_p8, %p4881_p6  ;;  %p4978_p13 = por %p4977_p12, %p4976_p11 }
  0x32   : > { %p4972_p10 = pneg %p4971_p9 }
  0x34   : > { %p4979_p0 = pnand %p4978_p13, %p4972_p10 }
  0x36   : > { %4982 = shalt.err (!%p4979_p0)
}
  0x37   : > { %4582 = dma.hbm_to_vmem [thread:$0]  (!%p5082_p5), %s5276_s7, 7168, %s308_s20, [#allocation9], %s5007_s22, %s5007_s22, %s5008_s23  }
  0x38   : > { %334 = sbr.rel (%p5072_p3) target bundleno = 2303 (0x8ff), region = 56 }
  0x3d   : > { %4988 = dma.done.wait (%p4583_p2), [#allocation4], 7168  }
  0x3e   : > { %4990 = vsyncadd (%p4583_p2), [#allocation4], 4294960128 }
  0x3f   : > { %4992 = dma.done.wait (%p4583_p2), [#allocation6], 20480  }
  0x40   : > { %4994 = vsyncadd (%p4583_p2), [#allocation6], 4294946816 }
  0x41   : > { %4996 = dma.done.wait (%p4583_p2), [#allocation9], 7168  }
  0x42   : > { %4998 = vsyncadd (%p4583_p2), [#allocation9], 4294960128  ;;  %v4607_v0 = vld [vmem:[#allocation3 + $0x78] sm:$0xff]   ;;  %v4611_v4 = vld [vmem:[#allocation3 + $0x70] sm:$0xff]   ;;  %p382_p2 = scmp.lt.s32.totalorder %s5067_s10, 1  ;;  %v5009_v36 = vmov 0.0  }
  0x43   : > { %v4608_v1 = vld [vmem:[#allocation3 + $0xf8] sm:$0xff]   ;;  %4072 = vmatprep.subr.bf16.mxu0 %v4607_v0  ;;  %v4612_v5 = vld [vmem:[#allocation3 + $0xf0] sm:$0xff]   ;;  %v4615_v8 = vld [vmem:[#allocation3 + $0x68] sm:$0xff]   ;;  %vm5010_vm0 = vmmov 0  }
  0x44   : > { %v4609_v2 = vld [vmem:[#allocation3 + $0x38] sm:$0xff]   ;;  %4094 = vmatprep.subr.bf16.mxu1 %v4608_v1  ;;  %v4613_v6 = vld [vmem:[#allocation3 + $0x30] sm:$0xff]   ;;  %v4616_v9 = vld [vmem:[#allocation3 + $0xe8] sm:$0xff]   ;;  %s5282_s10 = smov (!%p382_p2, %s5067_s10), 1 }
  0x45   : > { %v4610_v3 = vld [vmem:[#allocation3 + $0xb8] sm:$0xff]   ;;  %4073 = vmatpush3.bf16.msra.mxu0 %v4609_v2  ;;  %v4614_v7 = vld [vmem:[#allocation3 + $0xb0] sm:$0xff]   ;;  %v4617_v10 = vld [vmem:[#allocation3 + $0x28] sm:$0xff]   ;;  %s4070_s11 = sshll.u32 %s5282_s10, 4 }
  0x46   : > { %4095 = vmatpush3.bf16.msra.mxu1 %v4610_v3  ;;  %4074 = vmatprep.subr.bf16.mxu0 %v4611_v4  ;;  %v4618_v11 = vld [vmem:[#allocation3 + $0xa8] sm:$0xff]   ;;  %v4619_v12 = vld [vmem:[#allocation3 + $0x60] sm:$0xff]   ;;  %v4623_v16 = vld [vmem:[#allocation3 + $0x58] sm:$0xff]   ;;  %s386_s19 = scalar_lea.vmem %s5269_s0, %s4070_s11  ;;  %s391_s24 = scalar_lea.vmem %s5278_s9, %s4070_s11 }
  0x47   : > { %4096 = vmatprep.subr.bf16.mxu1 %v4612_v5  ;;  %v4620_v13 = vld [vmem:[#allocation3 + $0xe0] sm:$0xff]   ;;  %v4624_v17 = vld [vmem:[#allocation3 + $0xd8] sm:$0xff]   ;;  %v4627_v20 = vld [vmem:[#allocation3 + $0x50] sm:$0xff]  }
  0x48   : > { %v4621_v14 = vld [vmem:[#allocation3 + $0x20] sm:$0xff]   ;;  %v4625_v18 = vld [vmem:[#allocation3 + $0x18] sm:$0xff]   ;;  %v4628_v21 = vld [vmem:[#allocation3 + $0xd0] sm:$0xff]  }
  0x49   : > { %4075 = vmatpush3.bf16.msra.mxu0 %v4613_v6  ;;  %v4622_v15 = vld [vmem:[#allocation3 + $0xa0] sm:$0xff]   ;;  %v4626_v19 = vld [vmem:[#allocation3 + $0x98] sm:$0xff]   ;;  %v4629_v22 = vld [vmem:[#allocation3 + $0x10] sm:$0xff]  }
  0x4a   : > { %4097 = vmatpush3.bf16.msra.mxu1 %v4614_v7  ;;  %4076 = vmatprep.subr.bf16.mxu0 %v4615_v8  ;;  %v4630_v23 = vld [vmem:[#allocation3 + $0x90] sm:$0xff]   ;;  %v4631_v24 = vld [vmem:[#allocation3 + $0x48] sm:$0xff]   ;;  %v4635_v28 = vld [vmem:[#allocation3 + $0x40] sm:$0xff]  }
  0x4b   : > { %4098 = vmatprep.subr.bf16.mxu1 %v4616_v9  ;;  %v4632_v25 = vld [vmem:[#allocation3 + $0xc8] sm:$0xff]   ;;  %v4636_v29 = vld [vmem:[#allocation3 + $0xc0] sm:$0xff]   ;;  %v4639_v35 = vld [vmem:[#allocation3 + $0x178] sm:$0xff]  }
  0x4c   : > { %v4633_v26 = vld [vmem:[#allocation3 + $0x8] sm:$0xff]   ;;  %v4637_v30 = vld [vmem:[#allocation3] sm:$0xff]   ;;  %v4640_v37 = vld [vmem:[#allocation3 + $0x138] sm:$0xff]  }
  0x4d   : > { %4077 = vmatpush3.bf16.msra.mxu0 %v4617_v10  ;;  %v4634_v27 = vld [vmem:[#allocation3 + $0x88] sm:$0xff]   ;;  %v4638_v31 = vld [vmem:[#allocation3 + $0x80] sm:$0xff]   ;;  %v4641_v38 = vld [vmem:[#allocation3 + $0x1b8] sm:$0xff]  }
  0x4e   : > { %4099 = vmatpush3.bf16.msra.mxu1 %v4618_v11  ;;  %4078 = vmatprep.subr.bf16.mxu0 %v4619_v12  ;;  %v393_v32 = vld [vmem:[%s386_s19] sm:$0xff]  ;;  %v394_v33 = vld [vmem:[%s386_s19 + $0x8] sm:$0xff]  ;;  %v4642_v48 = vld [vmem:[#allocation3 + $0x170] sm:$0xff]  }
  0x4f   : > { %4100 = vmatprep.subr.bf16.mxu1 %v4620_v13  ;;  %395 = vst [vmem:[#allocation2 + $0x8] sm:$0xff] %v393_v32  ;;  %396 = vst [vmem:[#allocation2 + $0x10] sm:$0xff] %v394_v33  ;;  %v533_v34 = vpack.c.bf16 %v394_v33, %v393_v32  ;;  %v4643_v49 = vld [vmem:[#allocation3 + $0x130] sm:$0xff]   ;;  %v4645_v51 = vld [vmem:[#allocation3 + $0x168] sm:$0xff]  }
  0x50   : > { %397 = vst [vmem:[#allocation2 + $0x6] sm:$0x2] %v393_v32  ;;  %398 = vst [vmem:[#allocation2 + $0x12] sm:$0x40] %v394_v33  ;;  %v4644_v50 = vld [vmem:[#allocation3 + $0x1b0] sm:$0xff]   ;;  %v4646_v52 = vld [vmem:[#allocation3 + $0x128] sm:$0xff]  }
  0x51   : > { %4079 = vmatpush3.bf16.msra.mxu0 %v4621_v14  ;;  %399 = vst [vmem:[#allocation2 + $0x4] sm:$0x4] %v393_v32  ;;  %400 = vst [vmem:[#allocation2 + $0x14] sm:$0x20] %v394_v33  ;;  %952 = vmatprep.mubr.bf16.mxu1 %v533_v34  ;;  %v4647_v53 = vld [vmem:[#allocation3 + $0x1a8] sm:$0xff]   ;;  %v4648_v54 = vld [vmem:[#allocation3 + $0x160] sm:$0xff]  }
  0x52   : > { %4101 = vmatpush3.bf16.msra.mxu1 %v4622_v15  ;;  %4080 = vmatprep.subr.bf16.mxu0 %v4623_v16  ;;  %401 = vst [vmem:[#allocation2 + $0x2] sm:$0x8] %v393_v32  ;;  %402 = vst [vmem:[#allocation2 + $0x16] sm:$0x10] %v394_v33  ;;  %v4649_v55 = vld [vmem:[#allocation3 + $0x120] sm:$0xff]   ;;  %v4651_v57 = vld [vmem:[#allocation3 + $0x158] sm:$0xff]  }
  0x53   : > { %4102 = vmatprep.subr.bf16.mxu1 %v4624_v17  ;;  %v4650_v56 = vld [vmem:[#allocation3 + $0x1a0] sm:$0xff]   ;;  %v4652_v58 = vld [vmem:[#allocation3 + $0x118] sm:$0xff]   ;;  %v4654_v60 = vld [vmem:[#allocation3 + $0x150] sm:$0xff]  }
  0x54   : > { %v4653_v59 = vld [vmem:[#allocation3 + $0x198] sm:$0xff]   ;;  %v4655_v62 = vld [vmem:[#allocation3 + $0x110] sm:$0xff]   ;;  %v4657_v1 = vld [vmem:[#allocation3 + $0x148] sm:$0xff]  }
  0x55   : > { %4081 = vmatpush3.bf16.msra.mxu0 %v4625_v18  ;;  %v4656_v0 = vld [vmem:[#allocation3 + $0x190] sm:$0xff]   ;;  %v4658_v3 = vld [vmem:[#allocation3 + $0x108] sm:$0xff]   ;;  %v4660_v5 = vld [vmem:[#allocation3 + $0x140] sm:$0xff]  }
  0x56   : > { %4103 = vmatpush3.bf16.msra.mxu1 %v4626_v19  ;;  %4082 = vmatprep.subr.bf16.mxu0 %v4627_v20  ;;  %v519_v40 = vld [vmem:[#allocation2 + $0xe] sm:$0xff]  ;;  %v4661_v6 = vld [vmem:[#allocation3 + $0x100] sm:$0xff]   ;;  %v4663_v14 = vld [vmem:[#allocation5 + $0x78] sm:$0xff]  }
  0x57   : > { %4104 = vmatprep.subr.bf16.mxu1 %v4628_v21  ;;  %v517_v43 = vld [vmem:[#allocation2 + $0xd] sm:$0xff]  ;;  %v4662_v7 = vld [vmem:[#allocation3 + $0x180] sm:$0xff]   ;;  %v4664_v15 = vld [vmem:[#allocation5 + $0xb8] sm:$0xff]  }
  0x58   : > { %v518_v39 = vld [vmem:[#allocation2 + $0x6] sm:$0xff]  ;;  %v521_v45 = vld [vmem:[#allocation2 + $0xf] sm:$0xff]  ;;  %v4665_v16 = vld [vmem:[#allocation5 + $0x38] sm:$0xff]  }
  0x59   : > { %4083 = vmatpush3.bf16.msra.mxu0 %v4629_v22  ;;  %v516_v41 = vld [vmem:[#allocation2 + $0x5] sm:$0xff]  ;;  %v531_v42 = vpack.c.bf16 %v519_v40, %v518_v39  ;;  %v527_v63 = vld [vmem:[#allocation2 + $0x12] sm:$0xff] }
  0x5a   : > { %4105 = vmatpush3.bf16.msra.mxu1 %v4630_v23  ;;  %4084 = vmatprep.subr.bf16.mxu0 %v4631_v24  ;;  %v520_v44 = vld [vmem:[#allocation2 + $0x7] sm:$0xff]  ;;  %v530_v46 = vpack.c.bf16 %v517_v43, %v516_v41  ;;  %v525_v9 = vld [vmem:[#allocation2 + $0x11] sm:$0xff] }
  0x5b   : > { %4106 = vmatprep.subr.bf16.mxu1 %v4632_v25  ;;  %v532_v47 = vpack.c.bf16 %v521_v45, %v520_v44  ;;  %911 = vmatprep.mubr.bf16.mxu0 %v531_v42  ;;  %v526_v61 = vld [vmem:[#allocation2 + $0xa] sm:$0xff]  ;;  %v529_v11 = vld [vmem:[#allocation2 + $0x13] sm:$0xff]  ;;  %v4672_v23 = vld [vmem:[#allocation5 + $0x60] sm:$0xff]  }
  0x5c   : > { %v535_v2 = vpack.c.bf16 %v527_v63, %v526_v61  ;;  %v4659_v4 = vld [vmem:[#allocation3 + $0x188] sm:$0xff]   ;;  %v4666_v17 = vld [vmem:[#allocation5 + $0x70] sm:$0xff]   ;;  %v4673_v24 = vld [vmem:[#allocation5 + $0xa0] sm:$0xff]  }
  0x5d   : > { %4085 = vmatpush3.bf16.msra.mxu0 %v4633_v26  ;;  %v524_v8 = vld [vmem:[#allocation2 + $0x9] sm:$0xff]  ;;  %v4674_v25 = vld [vmem:[#allocation5 + $0x20] sm:$0xff]   ;;  %v4675_v26 = vld [vmem:[#allocation5 + $0x58] sm:$0xff]  }
  0x5e   : > { %4107 = vmatpush3.bf16.msra.mxu1 %v4634_v27  ;;  %4086 = vmatprep.subr.bf16.mxu0 %v4635_v28  ;;  %v528_v10 = vld [vmem:[#allocation2 + $0xb] sm:$0xff]  ;;  %v534_v12 = vpack.c.bf16 %v525_v9, %v524_v8  ;;  %v4676_v27 = vld [vmem:[#allocation5 + $0x98] sm:$0xff]  }
  0x5f   : > { %4108 = vmatprep.subr.bf16.mxu1 %v4636_v29  ;;  %v536_v13 = vpack.c.bf16 %v529_v11, %v528_v10  ;;  %v4667_v18 = vld [vmem:[#allocation5 + $0xb0] sm:$0xff]   ;;  %v4669_v20 = vld [vmem:[#allocation5 + $0x68] sm:$0xff]   ;;  %v4677_v28 = vld [vmem:[#allocation5 + $0x18] sm:$0xff]  }
  0x60   : > { %v4668_v19 = vld [vmem:[#allocation5 + $0x30] sm:$0xff]   ;;  %v4670_v21 = vld [vmem:[#allocation5 + $0xa8] sm:$0xff]   ;;  %v4687_v39 = vld [vmem:[#allocation7 + $0x78] sm:$0xff]  }
  0x61   : > { %4087 = vmatpush3.bf16.msra.mxu0 %v4637_v30  ;;  %v4671_v22 = vld [vmem:[#allocation5 + $0x28] sm:$0xff]   ;;  %v4678_v29 = vld [vmem:[#allocation5 + $0x50] sm:$0xff]  }
  0x62   : > { %4109 = vmatpush3.bf16.msra.mxu1 %v4638_v31  ;;  %4116 = vmatprep.subr.bf16.mxu0 %v4639_v35  ;;  %v4679_v30 = vld [vmem:[#allocation5 + $0x90] sm:$0xff]   ;;  %v4681_v32 = vld [vmem:[#allocation5 + $0x48] sm:$0xff]   ;;  %v4684_v35 = vld [vmem:[#allocation5 + $0x40] sm:$0xff]  }
  0x63   : > { %4434 = vmatprep.subr.bf16.mxu1 %v5009_v36  ;;  %v4680_v31 = vld [vmem:[#allocation5 + $0x10] sm:$0xff]   ;;  %v4682_v33 = vld [vmem:[#allocation5 + $0x88] sm:$0xff]  }
  0x64   : > { %912 = vmatmul.mubr.bf16.vlgmr.msra.gmra.mxu0 %v530_v46  ;;  %v4683_v34 = vld [vmem:[#allocation5 + $0x8] sm:$0xff]  }
  0x65   : > { %953 = vmatmul.mubr.bf16.vlgmr.msra.gmra.mxu1 %v532_v47  ;;  %4117 = vmatpush3.bf16.msra.mxu0 %v4640_v37  ;;  %v4685_v37 = vld [vmem:[#allocation5 + $0x80] sm:$0xff]  }
  0x66   : > { %4435 = vmatpush3.bf16.msra.mxu1 %v4641_v38  ;;  %4118 = vmatprep.subr.bf16.mxu0 %v4642_v48  ;;  %v4686_v38 = vld [vmem:[#allocation5] sm:$0xff]  }
  0x67   : > { %4436 = vmatprep.subr.bf16.mxu1 %v5009_v36  ;;  %4450 = vmatprep.mubr.msk.bf16.mxu1 %vm5010_vm0, %v5009_v36  ;;  %v3780_v47 = vld [vmem:[%s5271_s2] ss:$0 sm:$0xff] }
  0x68   : > { %993 = vmatprep.mubr.bf16.mxu0 %v535_v2 }
  0x69   : > { %4119 = vmatpush3.bf16.msra.mxu0 %v4643_v49 }
  0x6a   : > { %4437 = vmatpush3.bf16.msra.mxu1 %v4644_v50  ;;  %4120 = vmatprep.subr.bf16.mxu0 %v4645_v51 }
  0x6b   : > { %4438 = vmatprep.subr.bf16.mxu1 %v5009_v36 }
  0x6d   : > { %4121 = vmatpush3.bf16.msra.mxu0 %v4646_v52 }
  0x6e   : > { %4439 = vmatpush3.bf16.msra.mxu1 %v4647_v53  ;;  %4122 = vmatprep.subr.bf16.mxu0 %v4648_v54 }
  0x6f   : > { %4440 = vmatprep.subr.bf16.mxu1 %v5009_v36 }
  0x71   : > { %4123 = vmatpush3.bf16.msra.mxu0 %v4649_v55 }
  0x72   : > { %4441 = vmatpush3.bf16.msra.mxu1 %v4650_v56  ;;  %4124 = vmatprep.subr.bf16.mxu0 %v4651_v57 }
  0x73   : > { %4442 = vmatprep.subr.bf16.mxu1 %v5009_v36 }
  0x75   : > { %4125 = vmatpush3.bf16.msra.mxu0 %v4652_v58 }
  0x76   : > { %4443 = vmatpush3.bf16.msra.mxu1 %v4653_v59  ;;  %4126 = vmatprep.subr.bf16.mxu0 %v4654_v60 }
  0x77   : > { %4444 = vmatprep.subr.bf16.mxu1 %v5009_v36 }
  0x79   : > { %4127 = vmatpush3.bf16.msra.mxu0 %v4655_v62 }
  0x7a   : > { %4445 = vmatpush3.bf16.msra.mxu1 %v4656_v0  ;;  %4128 = vmatprep.subr.bf16.mxu0 %v4657_v1 }
  0x7b   : > { %4446 = vmatprep.subr.bf16.mxu1 %v5009_v36 }
  0x7d   : > { %4129 = vmatpush3.bf16.msra.mxu0 %v4658_v3 }
  0x7e   : > { %4447 = vmatpush3.bf16.msra.mxu1 %v4659_v4  ;;  %4130 = vmatprep.subr.bf16.mxu0 %v4660_v5 }
  0x7f   : > { %4448 = vmatprep.subr.bf16.mxu1 %v5009_v36 }
  0x81   : > { %4131 = vmatpush3.bf16.msra.mxu0 %v4661_v6 }
  0x82   : > { %4449 = vmatpush3.bf16.msra.mxu1 %v4662_v7  ;;  %4147 = vmatprep.subr.bf16.mxu0 %v4663_v14 }
  0x83   : > { %4454 = vmatprep.subr.bf16.mxu1 %v5009_v36 }
  0x84   : > { %994 = vmatmul.mubr.bf16.vlgmr.msra.gmra.mxu0 %v534_v12 }
  0x85   : > { %4451 = vmatmul.mubr.bf16.vlgmr.msra.gmra.mxu1 %v536_v13  ;;  %4148 = vmatpush3.bf16.msra.mxu0 %v4665_v16  ;;  %v4688_v13 = vld [vmem:[#allocation7 + $0x38] sm:$0xff]  }
  0x86   : > { %4470 = vmatprep.mubr.msk.bf16.mxu1 %vm5010_vm0, %v5009_v36  ;;  %4455 = vmatpush3.bf16.msra.mxu1 %v4664_v15 }
  0x87   : > { %4456 = vmatprep.subr.bf16.mxu1 %v5009_v36  ;;  %4149 = vmatprep.subr.bf16.mxu0 %v4666_v17 }
  0x89   : > { %4150 = vmatpush3.bf16.msra.mxu0 %v4668_v19  ;;  %v4689_v19 = vld [vmem:[#allocation7 + $0x70] sm:$0xff]  }
  0x8a   : > { %4457 = vmatpush3.bf16.msra.mxu1 %v4667_v18  ;;  %4151 = vmatprep.subr.bf16.mxu0 %v4669_v20 }
  0x8b   : > { %4458 = vmatprep.subr.bf16.mxu1 %v5009_v36 }
  0x8d   : > { %4152 = vmatpush3.bf16.msra.mxu0 %v4671_v22  ;;  %v4691_v22 = vld [vmem:[#allocation7 + $0x68] sm:$0xff]  }
  0x8e   : > { %4459 = vmatpush3.bf16.msra.mxu1 %v4670_v21  ;;  %4153 = vmatprep.subr.bf16.mxu0 %v4672_v23  ;;  %v4690_v21 = vld [vmem:[#allocation7 + $0x30] sm:$0xff]   ;;  %v4692_v23 = vld [vmem:[#allocation7 + $0x28] sm:$0xff]  }
  0x8f   : > { %4460 = vmatprep.subr.bf16.mxu1 %v5009_v36 }
  0x91   : > { %4154 = vmatpush3.bf16.msra.mxu0 %v4674_v25  ;;  %v4694_v25 = vld [vmem:[#allocation7 + $0x20] sm:$0xff]  }
  0x92   : > { %4461 = vmatpush3.bf16.msra.mxu1 %v4673_v24  ;;  %4155 = vmatprep.subr.bf16.mxu0 %v4675_v26  ;;  %v4693_v24 = vld [vmem:[#allocation7 + $0x60] sm:$0xff]   ;;  %v4695_v26 = vld [vmem:[#allocation7 + $0x58] sm:$0xff]  }
  0x93   : > { %4462 = vmatprep.subr.bf16.mxu1 %v5009_v36 }
  0x95   : > { %4156 = vmatpush3.bf16.msra.mxu0 %v4677_v28  ;;  %v4697_v28 = vld [vmem:[#allocation7 + $0x50] sm:$0xff]  }
  0x96   : > { %4463 = vmatpush3.bf16.msra.mxu1 %v4676_v27  ;;  %4157 = vmatprep.subr.bf16.mxu0 %v4678_v29  ;;  %v4696_v27 = vld [vmem:[#allocation7 + $0x18] sm:$0xff]   ;;  %v4698_v29 = vld [vmem:[#allocation7 + $0x10] sm:$0xff]  }
  0x97   : > { %4464 = vmatprep.subr.bf16.mxu1 %v5009_v36 }
  0x99   : > { %4158 = vmatpush3.bf16.msra.mxu0 %v4680_v31  ;;  %v4700_v31 = vld [vmem:[#allocation7 + $0x8] sm:$0xff]  }
  0x9a   : > { %4465 = vmatpush3.bf16.msra.mxu1 %v4679_v30  ;;  %4159 = vmatprep.subr.bf16.mxu0 %v4681_v32  ;;  %v4699_v30 = vld [vmem:[#allocation7 + $0x48] sm:$0xff]   ;;  %v4701_v32 = vld [vmem:[#allocation7 + $0x40] sm:$0xff]  }
  0x9b   : > { %4466 = vmatprep.subr.bf16.mxu1 %v5009_v36 }
  0x9d   : > { %4160 = vmatpush3.bf16.msra.mxu0 %v4683_v34  ;;  %v4703_v34 = vld [vmem:[#allocation5 + $0x138] sm:$0xff]  }
  0x9e   : > { %4467 = vmatpush3.bf16.msra.mxu1 %v4682_v33  ;;  %4161 = vmatprep.subr.bf16.mxu0 %v4684_v35  ;;  %v4702_v33 = vld [vmem:[#allocation7] sm:$0xff]   ;;  %v4705_v35 = vld [vmem:[#allocation5 + $0xf8] sm:$0xff]  }
  0x9f   : > { %4468 = vmatprep.subr.bf16.mxu1 %v5009_v36 }
  0xa1   : > { %4162 = vmatpush3.bf16.msra.mxu0 %v4686_v38  ;;  %v4708_v38 = vld [vmem:[#allocation5 + $0xf0] sm:$0xff]  }
  0xa2   : > { %4469 = vmatpush3.bf16.msra.mxu1 %v4685_v37  ;;  %4178 = vmatprep.subr.bf16.mxu0 %v4687_v39  ;;  %v4706_v37 = vld [vmem:[#allocation5 + $0x130] sm:$0xff]  }
  0xa3   : > { %4200 = vmatprep.subr.bf16.mxu1 %v4703_v34 }
 0x124   : > { %v4088_v40 = vpop.f32.mrf.mxu0 }
 0x125   : > { %v4110_v41 = vpop.f32.mrf.mxu1 }
 0x126   : > { %v4089_v42 = vpop.f32.mrf.mxu0 }
 0x127   : > { %v4111_v43 = vpop.f32.mrf.mxu1  ;;  %v4090_v46 = vadd.f32 %v4089_v42, %v4088_v40  ;;  %v3837_v42 = vld [vmem:[%s5273_s4] ss:$0 sm:$0xff] }
 0x128   : > { %v4091_v44 = vpop.f32.mrf.mxu0  ;;  %v4112_v51 = vadd.f32 %v4111_v43, %v4110_v41 }
 0x129   : > { %v4113_v45 = vpop.f32.mrf.mxu1  ;;  %v914_v50 = vadd.f32 %v4090_v46, %v3780_v47 }
 0x12a   : > { %v4092_v48 = vpop.f32.mrf.mxu0 }
 0x12b   : > { %v4114_v49 = vpop.f32.mrf.mxu1  ;;  %v4093_v52 = vadd.f32 %v4092_v48, %v4091_v44  ;;  %v955_v57 = vadd.f32 %v4112_v51, %v914_v50 }
 0x12c   : > { %v4115_v59 = vadd.f32 %v4114_v49, %v4113_v45 }
 0x12d   : > { %v917_v58 = vadd.f32 %v4093_v52, %v3780_v47 }
 0x12f   : > { %v958_v2 = vadd.f32 %v4115_v59, %v917_v58  ;;  %v4704_v58 = vld [vmem:[#allocation5 + $0x178] sm:$0xff]  }
 0x144   : > { %v4132_v53 = vpop.f32.mrf.mxu0 }
 0x145   : > { %v1036_v54 = vpop.f32.mrf.mxu1 }
 0x146   : > { %v4133_v55 = vpop.f32.mrf.mxu0 }
 0x147   : > { %v4452_v56 = vpop.f32.mrf.mxu1  ;;  %v4134_v60 = vadd.f32 %v4133_v55, %v4132_v53 }
 0x148   : > { %v4135_v61 = vpop.f32.mrf.mxu0 }
 0x149   : > { %v1039_v62 = vpop.f32.mrf.mxu1  ;;  %v996_v63 = vadd.f32 %v4134_v60, %v955_v57  ;;  %v4707_v60 = vld [vmem:[#allocation5 + $0x170] sm:$0xff]  }
 0x14a   : > { %v4136_v0 = vpop.f32.mrf.mxu0 }
 0x14b   : > { %v4453_v1 = vpop.f32.mrf.mxu1  ;;  %v1037_v3 = vadd.f32 %v1036_v54, %v996_v63  ;;  %v4137_v4 = vadd.f32 %v4136_v0, %v4135_v61  ;;  %v4709_v61 = vld [vmem:[#allocation5 + $0x128] sm:$0xff]   ;;  %v4712_v0 = vld [vmem:[#allocation5 + $0x120] sm:$0xff]  }
 0x14c   : > { %v4711_v63 = vld [vmem:[#allocation5 + $0xe8] sm:$0xff]   ;;  %v4713_v1 = vld [vmem:[#allocation5 + $0x160] sm:$0xff]  }
 0x14d   : > { %vm1043_vm1 = vcmp.ge.f32.partialorder %v1037_v3, 0.0  ;;  %v1045_v5 = vmul.f32 0.2, %v1037_v3  ;;  %v999_v6 = vadd.f32 %v4137_v4, %v958_v2  ;;  %v4714_v2 = vld [vmem:[#allocation5 + $0xe0] sm:$0xff]   ;;  %v4716_v4 = vld [vmem:[#allocation5 + $0x158] sm:$0xff]  }
 0x14f   : > { %v1047_v7 = vsel %vm1043_vm1, %v1037_v3, %v1045_v5  ;;  %v1040_v8 = vadd.f32 %v1039_v62, %v999_v6  ;;  %v4710_v62 = vld [vmem:[#allocation5 + $0x168] sm:$0xff]   ;;  %v4717_v5 = vld [vmem:[#allocation5 + $0xd8] sm:$0xff]   ;;  %v4718_v6 = vld [vmem:[#allocation5 + $0x110] sm:$0xff]  }
 0x150   : > { %1051 = vst [vmem:[#allocation2 + $0x6] sm:$0x2] %v1047_v7  ;;  %1049 = vst [vmem:[#allocation2 + $0x8] sm:$0xff] %v1047_v7 }
 0x151   : > { %vm1044_vm2 = vcmp.ge.f32.partialorder %v1040_v8, 0.0  ;;  %v1046_v9 = vmul.f32 0.2, %v1040_v8  ;;  %v1350_v20 = vpack.c.bf16 %v1040_v8, %v1037_v3  ;;  %v4715_v3 = vld [vmem:[#allocation5 + $0x118] sm:$0xff]  }
 0x153   : > { %v1048_v10 = vsel %vm1044_vm2, %v1040_v8, %v1046_v9  ;;  %v4720_v8 = vld [vmem:[#allocation5 + $0xd0] sm:$0xff]   ;;  %v4721_v9 = vld [vmem:[#allocation5 + $0x108] sm:$0xff]  }
 0x154   : > { %1052 = vst [vmem:[#allocation2 + $0x12] sm:$0x40] %v1048_v10  ;;  %1050 = vst [vmem:[#allocation2 + $0x10] sm:$0xff] %v1048_v10  ;;  %v1109_v11 = vpack.c.bf16 %v1048_v10, %v1047_v7  ;;  %v4719_v7 = vld [vmem:[#allocation5 + $0x150] sm:$0xff]   ;;  %v4722_v10 = vld [vmem:[#allocation5 + $0x148] sm:$0xff]  }
 0x156   : > { %1293 = vmatprep.mubr.bf16.mxu0 %v1109_v11  ;;  %v4723_v11 = vld [vmem:[#allocation5 + $0xc8] sm:$0xff]  }
 0x157   : > { %v1102_v12 = vld [vmem:[#allocation2 + $0x7] sm:$0xff] }
 0x15b   : > { %v1106_v14 = vld [vmem:[#allocation2 + $0x9] sm:$0xff]  ;;  %v1107_v15 = vld [vmem:[#allocation2 + $0x11] sm:$0xff] }
 0x15c   : > { %v1103_v16 = vld [vmem:[#allocation2 + $0xf] sm:$0xff]  ;;  %v1110_v17 = vpack.c.bf16 %v1107_v15, %v1106_v14  ;;  %v4726_v14 = vld [vmem:[#allocation5 + $0xc0] sm:$0xff]   ;;  %v4727_v15 = vld [vmem:[#allocation7 + $0xf8] sm:$0xff]  }
 0x15d   : > { %v1108_v18 = vpack.c.bf16 %v1103_v16, %v1102_v12  ;;  %v4724_v12 = vld [vmem:[#allocation5 + $0x100] sm:$0xff]  }
 0x15e   : > { %4471 = vmatmul.mubr.bf16.vlgmr.msra.gmra.mxu1 %v1110_v17  ;;  %v3862_v17 = vld [vmem:[%s5275_s6] ss:$0 sm:$0xff] }
 0x15f   : > { %1294 = vmatmul.mubr.bf16.vlgmr.msra.gmra.mxu0 %v1108_v18  ;;  %4201 = vmatpush3.bf16.msra.mxu1 %v4705_v35 }
 0x160   : > { %1518 = vmatprep.mubr.bf16.mxu0 %v1350_v20  ;;  %4179 = vmatpush3.bf16.msra.mxu0 %v4688_v13  ;;  %v4725_v13 = vld [vmem:[#allocation5 + $0x140] sm:$0xff]  }
 0x161   : > { %4180 = vmatprep.subr.bf16.mxu0 %v4689_v19  ;;  %4202 = vmatprep.subr.bf16.mxu1 %v4706_v37 }
 0x163   : > { %4203 = vmatpush3.bf16.msra.mxu1 %v4708_v38  ;;  %v4729_v38 = vld [vmem:[#allocation7 + $0xf0] sm:$0xff]  }
 0x164   : > { %4181 = vmatpush3.bf16.msra.mxu0 %v4690_v21  ;;  %4204 = vmatprep.subr.bf16.mxu1 %v4709_v61 }
 0x165   : > { %4182 = vmatprep.subr.bf16.mxu0 %v4691_v22 }
 0x167   : > { %4205 = vmatpush3.bf16.msra.mxu1 %v4711_v63 }
 0x168   : > { %4183 = vmatpush3.bf16.msra.mxu0 %v4692_v23  ;;  %4206 = vmatprep.subr.bf16.mxu1 %v4712_v0 }
 0x169   : > { %4184 = vmatprep.subr.bf16.mxu0 %v4693_v24 }
 0x16b   : > { %4207 = vmatpush3.bf16.msra.mxu1 %v4714_v2 }
 0x16c   : > { %4185 = vmatpush3.bf16.msra.mxu0 %v4694_v25  ;;  %4208 = vmatprep.subr.bf16.mxu1 %v4715_v3 }
 0x16d   : > { %4186 = vmatprep.subr.bf16.mxu0 %v4695_v26 }
 0x16f   : > { %4209 = vmatpush3.bf16.msra.mxu1 %v4717_v5 }
 0x170   : > { %4187 = vmatpush3.bf16.msra.mxu0 %v4696_v27  ;;  %4210 = vmatprep.subr.bf16.mxu1 %v4718_v6 }
 0x171   : > { %4188 = vmatprep.subr.bf16.mxu0 %v4697_v28 }
 0x173   : > { %4211 = vmatpush3.bf16.msra.mxu1 %v4720_v8 }
 0x174   : > { %4189 = vmatpush3.bf16.msra.mxu0 %v4698_v29  ;;  %4212 = vmatprep.subr.bf16.mxu1 %v4721_v9 }
 0x175   : > { %4190 = vmatprep.subr.bf16.mxu0 %v4699_v30 }
 0x177   : > { %4213 = vmatpush3.bf16.msra.mxu1 %v4723_v11 }
 0x178   : > { %4191 = vmatpush3.bf16.msra.mxu0 %v4700_v31  ;;  %4214 = vmatprep.subr.bf16.mxu1 %v4724_v12  ;;  %v4728_v31 = vld [vmem:[#allocation7 + $0xb8] sm:$0xff]  }
 0x179   : > { %4192 = vmatprep.subr.bf16.mxu0 %v4701_v32  ;;  %v4744_v12 = vld [vmem:[#allocation5 + $0x238] sm:$0xff]  }
 0x17b   : > { %4215 = vmatpush3.bf16.msra.mxu1 %v4726_v14  ;;  %v4747_v14 = vld [vmem:[#allocation5 + $0x230] sm:$0xff]  }
 0x17c   : > { %4193 = vmatpush3.bf16.msra.mxu0 %v4702_v33  ;;  %4231 = vmatprep.subr.bf16.mxu1 %v4727_v15  ;;  %v4749_v15 = vld [vmem:[#allocation5 + $0x1e8] sm:$0xff]  }
 0x17d   : > { %4474 = vmatprep.subr.bf16.mxu0 %v5009_v36 }
 0x21e   : > { %v1336_v39 = vpop.f32.mrf.mxu1 }
 0x21f   : > { %v4163_v40 = vpop.f32.mrf.mxu0 }
 0x220   : > { %v4472_v41 = vpop.f32.mrf.mxu1 }
 0x221   : > { %v4164_v43 = vpop.f32.mrf.mxu0  ;;  %v4731_v41 = vld [vmem:[#allocation7 + $0xe8] sm:$0xff]  }
 0x222   : > { %v4165_v44 = vadd.f32 %v4164_v43, %v4163_v40  ;;  %v1339_v45 = vpop.f32.mrf.mxu1  ;;  %v4730_v40 = vld [vmem:[#allocation7 + $0xb0] sm:$0xff]   ;;  %v4733_v43 = vld [vmem:[#allocation7 + $0xe0] sm:$0xff]  }
 0x223   : > { %v4166_v46 = vpop.f32.mrf.mxu0 }
 0x224   : > { %v1296_v47 = vadd.f32 %v4165_v44, %v3837_v42  ;;  %v4473_v48 = vpop.f32.mrf.mxu1  ;;  %v4734_v44 = vld [vmem:[#allocation7 + $0xa0] sm:$0xff]  }
 0x225   : > { %v4167_v49 = vpop.f32.mrf.mxu0  ;;  %v4738_v48 = vld [vmem:[#allocation7 + $0x90] sm:$0xff]  }
 0x226   : > { %v1337_v50 = vadd.f32 %v1336_v39, %v1296_v47  ;;  %v4168_v51 = vadd.f32 %v4167_v49, %v4166_v46  ;;  %v4736_v46 = vld [vmem:[#allocation7 + $0x98] sm:$0xff]   ;;  %v4737_v47 = vld [vmem:[#allocation7 + $0xd0] sm:$0xff]   ;;  %v4739_v49 = vld [vmem:[#allocation7 + $0xc8] sm:$0xff]  }
 0x228   : > { %v1299_v52 = vadd.f32 %v4168_v51, %v3837_v42  ;;  %v1345_v53 = vmul.f32 0.2, %v1337_v50  ;;  %vm1343_vm3 = vcmp.ge.f32.partialorder %v1337_v50, 0.0  ;;  %v4732_v42 = vld [vmem:[#allocation7 + $0xa8] sm:$0xff]   ;;  %v4741_v51 = vld [vmem:[#allocation7 + $0xc0] sm:$0xff]  }
 0x22a   : > { %v1340_v54 = vadd.f32 %v1339_v45, %v1299_v52  ;;  %v1347_v56 = vsel %vm1343_vm3, %v1337_v50, %v1345_v53  ;;  %v4735_v45 = vld [vmem:[#allocation7 + $0xd8] sm:$0xff]   ;;  %v4740_v50 = vld [vmem:[#allocation7 + $0x88] sm:$0xff]   ;;  %v4742_v52 = vld [vmem:[#allocation7 + $0x80] sm:$0xff]  }
 0x22b   : > { %v4743_v53 = vld [vmem:[#allocation5 + $0x1f8] sm:$0xff]  }
 0x22c   : > { %vm1344_vm4 = vcmp.ge.f32.partialorder %v1340_v54, 0.0  ;;  %v1346_v55 = vmul.f32 0.2, %v1340_v54 }
 0x22e   : > { %v1348_v57 = vsel %vm1344_vm4, %v1340_v54, %v1346_v55  ;;  %v4745_v54 = vld [vmem:[#allocation5 + $0x1b8] sm:$0xff]   ;;  %v4746_v55 = vld [vmem:[#allocation5 + $0x1f0] sm:$0xff]  }
 0x22f   : > { %v1349_v59 = vpack.c.bf16 %v1348_v57, %v1347_v56  ;;  %v4748_v56 = vld [vmem:[#allocation5 + $0x1b0] sm:$0xff]  }
 0x231   : > { %1519 = vmatmul.mubr.bf16.vlgmr.msra.gmra.mxu0 %v1349_v59 }
 0x232   : > { %4475 = vmatpush3.bf16.msra.mxu0 %v4704_v58  ;;  %4490 = vmatprep.mubr.msk.bf16.mxu0 %vm5010_vm0, %v5009_v36 }
 0x233   : > { %4476 = vmatprep.subr.bf16.mxu0 %v5009_v36 }
 0x236   : > { %4477 = vmatpush3.bf16.msra.mxu0 %v4707_v60  ;;  %v3880_v60 = vld [vmem:[%s5273_s4 + $0x1] ss:$0 sm:$0xff] }
 0x237   : > { %4478 = vmatprep.subr.bf16.mxu0 %v5009_v36 }
 0x23a   : > { %4479 = vmatpush3.bf16.msra.mxu0 %v4710_v62 }
 0x23b   : > { %4480 = vmatprep.subr.bf16.mxu0 %v5009_v36 }
 0x23e   : > { %4481 = vmatpush3.bf16.msra.mxu0 %v4713_v1 }
 0x23f   : > { %4482 = vmatprep.subr.bf16.mxu0 %v5009_v36 }
 0x242   : > { %4483 = vmatpush3.bf16.msra.mxu0 %v4716_v4 }
 0x243   : > { %4484 = vmatprep.subr.bf16.mxu0 %v5009_v36 }
 0x246   : > { %4485 = vmatpush3.bf16.msra.mxu0 %v4719_v7 }
 0x247   : > { %4486 = vmatprep.subr.bf16.mxu0 %v5009_v36 }
 0x24a   : > { %4487 = vmatpush3.bf16.msra.mxu0 %v4722_v10 }
 0x24b   : > { %4488 = vmatprep.subr.bf16.mxu0 %v5009_v36 }
 0x24e   : > { %4489 = vmatpush3.bf16.msra.mxu0 %v4725_v13 }
 0x24f   : > { %4253 = vmatprep.subr.bf16.mxu0 %v4743_v53 }
 0x2f1   : > { %v4194_v16 = vpop.f32.mrf.mxu0 }
 0x2f3   : > { %v4195_v18 = vpop.f32.mrf.mxu0 }
 0x2f4   : > { %v4196_v19 = vadd.f32 %v4195_v18, %v4194_v16  ;;  %v4750_v16 = vld [vmem:[#allocation5 + $0x228] sm:$0xff]   ;;  %v4752_v18 = vld [vmem:[#allocation5 + $0x1e0] sm:$0xff]  }
 0x2f5   : > { %v4197_v20 = vpop.f32.mrf.mxu0 }
 0x2f6   : > { %v1521_v21 = vadd.f32 %v4196_v19, %v3862_v17  ;;  %v4753_v19 = vld [vmem:[#allocation5 + $0x220] sm:$0xff]  }
 0x2f7   : > { %v4198_v22 = vpop.f32.mrf.mxu0 }
 0x2f8   : > { %vm1527_vm5 = vcmp.ge.f32.partialorder %v1521_v21, 0.0  ;;  %v1529_v23 = vmul.f32 0.2, %v1521_v21  ;;  %v4199_v24 = vadd.f32 %v4198_v22, %v4197_v20  ;;  %v4754_v20 = vld [vmem:[#allocation5 + $0x1a0] sm:$0xff]   ;;  %v4756_v22 = vld [vmem:[#allocation5 + $0x218] sm:$0xff]  }
 0x2fa   : > { %v1531_v25 = vsel %vm1527_vm5, %v1521_v21, %v1529_v23  ;;  %v1524_v26 = vadd.f32 %v4199_v24, %v3862_v17  ;;  %v4751_v17 = vld [vmem:[#allocation5 + $0x1a8] sm:$0xff]   ;;  %v4757_v23 = vld [vmem:[#allocation5 + $0x198] sm:$0xff]   ;;  %v4758_v24 = vld [vmem:[#allocation5 + $0x1d0] sm:$0xff]  }
 0x2fb   : > { %1535 = vst [vmem:[#allocation2 + $0x6] sm:$0x2] %v1531_v25  ;;  %1537 = vst [vmem:[#allocation2 + $0x4] sm:$0x4] %v1531_v25 }
 0x2fc   : > { %1533 = vst [vmem:[#allocation2 + $0x8] sm:$0xff] %v1531_v25  ;;  %vm1528_vm6 = vcmp.ge.f32.partialorder %v1524_v26, 0.0  ;;  %v1530_v27 = vmul.f32 0.2, %v1524_v26  ;;  %v1838_v39 = vpack.c.bf16 %v1524_v26, %v1521_v21  ;;  %v4755_v21 = vld [vmem:[#allocation5 + $0x1d8] sm:$0xff]  }
 0x2fe   : > { %v1532_v28 = vsel %vm1528_vm6, %v1524_v26, %v1530_v27  ;;  %v4760_v26 = vld [vmem:[#allocation5 + $0x190] sm:$0xff]   ;;  %v4761_v27 = vld [vmem:[#allocation5 + $0x1c8] sm:$0xff]  }
 0x2ff   : > { %1536 = vst [vmem:[#allocation2 + $0x12] sm:$0x40] %v1532_v28  ;;  %1538 = vst [vmem:[#allocation2 + $0x14] sm:$0x20] %v1532_v28  ;;  %v1597_v29 = vpack.c.bf16 %v1532_v28, %v1531_v25  ;;  %v4759_v25 = vld [vmem:[#allocation5 + $0x210] sm:$0xff]  }
 0x300   : > { %1534 = vst [vmem:[#allocation2 + $0x10] sm:$0xff] %v1532_v28  ;;  %v4762_v28 = vld [vmem:[#allocation5 + $0x208] sm:$0xff]  }
 0x301   : > { %1781 = vmatprep.mubr.bf16.mxu1 %v1597_v29  ;;  %v4763_v29 = vld [vmem:[#allocation5 + $0x188] sm:$0xff]  }
 0x303   : > { %v1590_v30 = vld [vmem:[#allocation2 + $0x6] sm:$0xff] }
 0x307   : > { %v1594_v32 = vld [vmem:[#allocation2 + $0xa] sm:$0xff]  ;;  %v1595_v33 = vld [vmem:[#allocation2 + $0x12] sm:$0xff] }
 0x308   : > { %v1591_v34 = vld [vmem:[#allocation2 + $0xe] sm:$0xff]  ;;  %v1598_v35 = vpack.c.bf16 %v1595_v33, %v1594_v32  ;;  %v4766_v32 = vld [vmem:[#allocation5 + $0x180] sm:$0xff]   ;;  %v4767_v33 = vld [vmem:[#allocation7 + $0x178] sm:$0xff]  }
 0x309   : > { %v1596_v37 = vpack.c.bf16 %v1591_v34, %v1590_v30  ;;  %v4764_v30 = vld [vmem:[#allocation5 + $0x1c0] sm:$0xff]  }
 0x30a   : > { %4491 = vmatmul.mubr.bf16.vlgmr.msra.gmra.mxu0 %v1598_v35  ;;  %v3906_v35 = vld [vmem:[%s5275_s6 + $0x1] ss:$0 sm:$0xff] }
 0x30b   : > { %1782 = vmatmul.mubr.bf16.vlgmr.msra.gmra.mxu1 %v1596_v37  ;;  %4254 = vmatpush3.bf16.msra.mxu0 %v4745_v54 }
 0x30c   : > { %2008 = vmatprep.mubr.bf16.mxu1 %v1838_v39  ;;  %4232 = vmatpush3.bf16.msra.mxu1 %v4728_v31  ;;  %v4765_v31 = vld [vmem:[#allocation5 + $0x200] sm:$0xff]  }
 0x30d   : > { %4233 = vmatprep.subr.bf16.mxu1 %v4729_v38  ;;  %4255 = vmatprep.subr.bf16.mxu0 %v4746_v55  ;;  %v4769_v55 = vld [vmem:[#allocation7 + $0x170] sm:$0xff]  }
 0x30f   : > { %4256 = vmatpush3.bf16.msra.mxu0 %v4748_v56 }
 0x310   : > { %4234 = vmatpush3.bf16.msra.mxu1 %v4730_v40  ;;  %4257 = vmatprep.subr.bf16.mxu0 %v4749_v15 }
 0x311   : > { %4235 = vmatprep.subr.bf16.mxu1 %v4731_v41 }
 0x313   : > { %4258 = vmatpush3.bf16.msra.mxu0 %v4751_v17 }
 0x314   : > { %4236 = vmatpush3.bf16.msra.mxu1 %v4732_v42  ;;  %4259 = vmatprep.subr.bf16.mxu0 %v4752_v18 }
 0x315   : > { %4237 = vmatprep.subr.bf16.mxu1 %v4733_v43 }
 0x317   : > { %4260 = vmatpush3.bf16.msra.mxu0 %v4754_v20 }
 0x318   : > { %4238 = vmatpush3.bf16.msra.mxu1 %v4734_v44  ;;  %4261 = vmatprep.subr.bf16.mxu0 %v4755_v21 }
 0x319   : > { %4239 = vmatprep.subr.bf16.mxu1 %v4735_v45 }
 0x31b   : > { %4262 = vmatpush3.bf16.msra.mxu0 %v4757_v23 }
 0x31c   : > { %4240 = vmatpush3.bf16.msra.mxu1 %v4736_v46  ;;  %4263 = vmatprep.subr.bf16.mxu0 %v4758_v24 }
 0x31d   : > { %4241 = vmatprep.subr.bf16.mxu1 %v4737_v47 }
 0x31f   : > { %4264 = vmatpush3.bf16.msra.mxu0 %v4760_v26 }
 0x320   : > { %4242 = vmatpush3.bf16.msra.mxu1 %v4738_v48  ;;  %4265 = vmatprep.subr.bf16.mxu0 %v4761_v27 }
 0x321   : > { %4243 = vmatprep.subr.bf16.mxu1 %v4739_v49  ;;  %v4768_v49 = vld [vmem:[#allocation7 + $0x138] sm:$0xff]  }
 0x323   : > { %4266 = vmatpush3.bf16.msra.mxu0 %v4763_v29  ;;  %v4784_v29 = vld [vmem:[#allocation5 + $0x2f8] sm:$0xff]  }
 0x324   : > { %4244 = vmatpush3.bf16.msra.mxu1 %v4740_v50  ;;  %4267 = vmatprep.subr.bf16.mxu0 %v4764_v30 }
 0x325   : > { %4245 = vmatprep.subr.bf16.mxu1 %v4741_v51 }
 0x327   : > { %4268 = vmatpush3.bf16.msra.mxu0 %v4766_v32  ;;  %v4789_v32 = vld [vmem:[#allocation5 + $0x2a8] sm:$0xff]  }
 0x328   : > { %4246 = vmatpush3.bf16.msra.mxu1 %v4742_v52  ;;  %4284 = vmatprep.subr.bf16.mxu0 %v4767_v33  ;;  %v4790_v33 = vld [vmem:[#allocation5 + $0x2e8] sm:$0xff]  }
 0x329   : > { %4494 = vmatprep.subr.bf16.mxu1 %v5009_v36 }
 0x3ca   : > { %v1824_v57 = vpop.f32.mrf.mxu0 }
 0x3cb   : > { %v4216_v58 = vpop.f32.mrf.mxu1 }
 0x3cc   : > { %v4492_v59 = vpop.f32.mrf.mxu0 }
 0x3cd   : > { %v4217_v61 = vpop.f32.mrf.mxu1  ;;  %v4772_v59 = vld [vmem:[#allocation7 + $0x128] sm:$0xff]  }
 0x3ce   : > { %v4218_v62 = vadd.f32 %v4217_v61, %v4216_v58  ;;  %v1827_v63 = vpop.f32.mrf.mxu0  ;;  %v4771_v58 = vld [vmem:[#allocation7 + $0x168] sm:$0xff]   ;;  %v4774_v61 = vld [vmem:[#allocation7 + $0x120] sm:$0xff]  }
 0x3cf   : > { %v4219_v0 = vpop.f32.mrf.mxu1 }
 0x3d0   : > { %v1784_v1 = vadd.f32 %v4218_v62, %v3880_v60  ;;  %v4493_v2 = vpop.f32.mrf.mxu0  ;;  %v4775_v62 = vld [vmem:[#allocation7 + $0x158] sm:$0xff]  }
 0x3d1   : > { %v4220_v3 = vpop.f32.mrf.mxu1  ;;  %v4779_v2 = vld [vmem:[#allocation7 + $0x148] sm:$0xff]  }
 0x3d2   : > { %v1825_v4 = vadd.f32 %v1824_v57, %v1784_v1  ;;  %v4221_v5 = vadd.f32 %v4220_v3, %v4219_v0  ;;  %v4770_v57 = vld [vmem:[#allocation7 + $0x130] sm:$0xff]   ;;  %v4780_v3 = vld [vmem:[#allocation7 + $0x108] sm:$0xff]  }
 0x3d3   : > { %v4777_v0 = vld [vmem:[#allocation7 + $0x150] sm:$0xff]  }
 0x3d4   : > { %v1787_v6 = vadd.f32 %v4221_v5, %v3880_v60  ;;  %v1833_v7 = vmul.f32 0.2, %v1825_v4  ;;  %vm1831_vm7 = vcmp.ge.f32.partialorder %v1825_v4, 0.0  ;;  %v4773_v60 = vld [vmem:[#allocation7 + $0x160] sm:$0xff]   ;;  %v4778_v1 = vld [vmem:[#allocation7 + $0x110] sm:$0xff]  }
 0x3d5   : > { %v4782_v5 = vld [vmem:[#allocation7 + $0x100] sm:$0xff]  }
 0x3d6   : > { %v1828_v8 = vadd.f32 %v1827_v63, %v1787_v6  ;;  %v1835_v10 = vsel %vm1831_vm7, %v1825_v4, %v1833_v7  ;;  %v4776_v63 = vld [vmem:[#allocation7 + $0x118] sm:$0xff]   ;;  %v4781_v4 = vld [vmem:[#allocation7 + $0x140] sm:$0xff]  }
 0x3d7   : > { %v4783_v6 = vld [vmem:[#allocation5 + $0x2b8] sm:$0xff]  }
 0x3d8   : > { %vm1832_vm8 = vcmp.ge.f32.partialorder %v1828_v8, 0.0  ;;  %v1834_v9 = vmul.f32 0.2, %v1828_v8  ;;  %v4785_v7 = vld [vmem:[#allocation5 + $0x278] sm:$0xff]  }
 0x3da   : > { %v1836_v11 = vsel %vm1832_vm8, %v1828_v8, %v1834_v9  ;;  %v4786_v8 = vld [vmem:[#allocation5 + $0x2b0] sm:$0xff]  }
 0x3db   : > { %v1837_v13 = vpack.c.bf16 %v1836_v11, %v1835_v10  ;;  %v4788_v9 = vld [vmem:[#allocation5 + $0x270] sm:$0xff]  }
 0x3dd   : > { %2009 = vmatmul.mubr.bf16.vlgmr.msra.gmra.mxu1 %v1837_v13  ;;  %v3924_v13 = vld [vmem:[%s5273_s4 + $0x2] ss:$0 sm:$0xff] }
 0x3de   : > { %4495 = vmatpush3.bf16.msra.mxu1 %v4744_v12  ;;  %4510 = vmatprep.mubr.msk.bf16.mxu1 %vm5010_vm0, %v5009_v36 }
 0x3df   : > { %4496 = vmatprep.subr.bf16.mxu1 %v5009_v36 }
 0x3e2   : > { %4497 = vmatpush3.bf16.msra.mxu1 %v4747_v14 }
 0x3e3   : > { %4498 = vmatprep.subr.bf16.mxu1 %v5009_v36 }
 0x3e6   : > { %4499 = vmatpush3.bf16.msra.mxu1 %v4750_v16 }
 0x3e7   : > { %4500 = vmatprep.subr.bf16.mxu1 %v5009_v36 }
 0x3ea   : > { %4501 = vmatpush3.bf16.msra.mxu1 %v4753_v19 }
 0x3eb   : > { %4502 = vmatprep.subr.bf16.mxu1 %v5009_v36 }
 0x3ee   : > { %4503 = vmatpush3.bf16.msra.mxu1 %v4756_v22 }
 0x3ef   : > { %4504 = vmatprep.subr.bf16.mxu1 %v5009_v36 }
 0x3f2   : > { %4505 = vmatpush3.bf16.msra.mxu1 %v4759_v25 }
 0x3f3   : > { %4506 = vmatprep.subr.bf16.mxu1 %v5009_v36 }
 0x3f6   : > { %4507 = vmatpush3.bf16.msra.mxu1 %v4762_v28 }
 0x3f7   : > { %4508 = vmatprep.subr.bf16.mxu1 %v5009_v36 }
 0x3fa   : > { %4509 = vmatpush3.bf16.msra.mxu1 %v4765_v31  ;;  %v4787_v31 = vld [vmem:[#allocation5 + $0x2f0] sm:$0xff]  }
 0x3fb   : > { %4306 = vmatprep.subr.bf16.mxu1 %v4783_v6 }
 0x49d   : > { %v4247_v34 = vpop.f32.mrf.mxu1 }
 0x49f   : > { %v4248_v37 = vpop.f32.mrf.mxu1 }
 0x4a0   : > { %v4249_v38 = vadd.f32 %v4248_v37, %v4247_v34  ;;  %v4791_v34 = vld [vmem:[#allocation5 + $0x268] sm:$0xff]   ;;  %v4793_v37 = vld [vmem:[#allocation5 + $0x2e0] sm:$0xff]  }
 0x4a1   : > { %v4250_v39 = vpop.f32.mrf.mxu1 }
 0x4a2   : > { %v2011_v40 = vadd.f32 %v4249_v38, %v3906_v35  ;;  %v4794_v38 = vld [vmem:[#allocation5 + $0x260] sm:$0xff]  }
 0x4a3   : > { %v4251_v41 = vpop.f32.mrf.mxu1 }
 0x4a4   : > { %vm2017_vm9 = vcmp.ge.f32.partialorder %v2011_v40, 0.0  ;;  %v2019_v42 = vmul.f32 0.2, %v2011_v40  ;;  %v4252_v43 = vadd.f32 %v4251_v41, %v4250_v39  ;;  %v4795_v39 = vld [vmem:[#allocation5 + $0x298] sm:$0xff]  }
 0x4a5   : > { %v4797_v41 = vld [vmem:[#allocation5 + $0x258] sm:$0xff]  }
 0x4a6   : > { %v2021_v44 = vsel %vm2017_vm9, %v2011_v40, %v2019_v42  ;;  %v2014_v45 = vadd.f32 %v4252_v43, %v3906_v35  ;;  %v4792_v35 = vld [vmem:[#allocation5 + $0x2a0] sm:$0xff]   ;;  %v4798_v42 = vld [vmem:[#allocation5 + $0x290] sm:$0xff]  }
 0x4a7   : > { %2025 = vst [vmem:[#allocation2 + $0x6] sm:$0x2] %v2021_v44  ;;  %2027 = vst [vmem:[#allocation2 + $0x4] sm:$0x4] %v2021_v44  ;;  %v4799_v43 = vld [vmem:[#allocation5 + $0x2d0] sm:$0xff]  }
 0x4a8   : > { %2029 = vst [vmem:[#allocation2 + $0x2] sm:$0x8] %v2021_v44  ;;  %2031 = vst [vmem:[#allocation2] sm:$0x10] %v2021_v44  ;;  %vm2018_vm10 = vcmp.ge.f32.partialorder %v2014_v45, 0.0  ;;  %v2331_v56 = vpack.c.bf16 %v2014_v45, %v2011_v40  ;;  %v4796_v40 = vld [vmem:[#allocation5 + $0x2d8] sm:$0xff]  }
 0x4a9   : > { %2023 = vst [vmem:[#allocation2 + $0x8] sm:$0xff] %v2021_v44  ;;  %v2020_v46 = vmul.f32 0.2, %v2014_v45 }
 0x4ab   : > { %v2022_v47 = vsel %vm2018_vm10, %v2014_v45, %v2020_v46  ;;  %v4801_v45 = vld [vmem:[#allocation5 + $0x288] sm:$0xff]  }
 0x4ac   : > { %2026 = vst [vmem:[#allocation2 + $0x12] sm:$0x40] %v2022_v47  ;;  %2028 = vst [vmem:[#allocation2 + $0x14] sm:$0x20] %v2022_v47  ;;  %v2090_v48 = vpack.c.bf16 %v2022_v47, %v2021_v44  ;;  %v4800_v44 = vld [vmem:[#allocation5 + $0x250] sm:$0xff]   ;;  %v4802_v46 = vld [vmem:[#allocation5 + $0x2c8] sm:$0xff]  }
 0x4ad   : > { %2030 = vst [vmem:[#allocation2 + $0x16] sm:$0x10] %v2022_v47  ;;  %2032 = vst [vmem:[#allocation2 + $0x18] sm:$0x8] %v2022_v47 }
 0x4ae   : > { %2024 = vst [vmem:[#allocation2 + $0x10] sm:$0xff] %v2022_v47  ;;  %2274 = vmatprep.mubr.bf16.mxu0 %v2090_v48  ;;  %v4803_v47 = vld [vmem:[#allocation5 + $0x248] sm:$0xff]   ;;  %v4804_v48 = vld [vmem:[#allocation5 + $0x280] sm:$0xff]  }
 0x4b0   : > { %v2084_v52 = vld [vmem:[#allocation2 + $0x4] sm:$0xff] }
 0x4b5   : > { %v2085_v50 = vld [vmem:[#allocation2 + $0xc] sm:$0xff]  ;;  %v2088_v51 = vld [vmem:[#allocation2 + $0x14] sm:$0xff] }
 0x4b6   : > { %v2091_v53 = vpack.c.bf16 %v2088_v51, %v2085_v50  ;;  %v2089_v54 = vpack.c.bf16 %v2085_v50, %v2084_v52  ;;  %v4806_v50 = vld [vmem:[#allocation5 + $0x240] sm:$0xff]   ;;  %v4807_v51 = vld [vmem:[#allocation7 + $0x1f8] sm:$0xff]  }
 0x4b8   : > { %4511 = vmatmul.mubr.bf16.vlgmr.msra.gmra.mxu1 %v2091_v53  ;;  %2275 = vmatmul.mubr.bf16.vlgmr.msra.gmra.mxu0 %v2089_v54  ;;  %v3950_v53 = vld [vmem:[%s5275_s6 + $0x2] ss:$0 sm:$0xff] }
 0x4b9   : > { %2501 = vmatprep.mubr.bf16.mxu0 %v2331_v56  ;;  %4285 = vmatpush3.bf16.msra.mxu0 %v4768_v49  ;;  %v4805_v49 = vld [vmem:[#allocation5 + $0x2c0] sm:$0xff]  }
 0x4ba   : > { %4286 = vmatprep.subr.bf16.mxu0 %v4769_v55  ;;  %4307 = vmatpush3.bf16.msra.mxu1 %v4785_v7  ;;  %v4809_v7 = vld [vmem:[#allocation7 + $0x1f0] sm:$0xff]  }
 0x4bb   : > { %4308 = vmatprep.subr.bf16.mxu1 %v4786_v8 }
 0x4bd   : > { %4287 = vmatpush3.bf16.msra.mxu0 %v4770_v57 }
 0x4be   : > { %4288 = vmatprep.subr.bf16.mxu0 %v4771_v58  ;;  %4309 = vmatpush3.bf16.msra.mxu1 %v4788_v9  ;;  %v4810_v9 = vld [vmem:[#allocation7 + $0x1b0] sm:$0xff]  }
 0x4bf   : > { %4310 = vmatprep.subr.bf16.mxu1 %v4789_v32 }
 0x4c1   : > { %4289 = vmatpush3.bf16.msra.mxu0 %v4772_v59 }
 0x4c2   : > { %4290 = vmatprep.subr.bf16.mxu0 %v4773_v60  ;;  %4311 = vmatpush3.bf16.msra.mxu1 %v4791_v34 }
 0x4c3   : > { %4312 = vmatprep.subr.bf16.mxu1 %v4792_v35 }
 0x4c5   : > { %4291 = vmatpush3.bf16.msra.mxu0 %v4774_v61 }
 0x4c6   : > { %4292 = vmatprep.subr.bf16.mxu0 %v4775_v62  ;;  %4313 = vmatpush3.bf16.msra.mxu1 %v4794_v38 }
 0x4c7   : > { %4314 = vmatprep.subr.bf16.mxu1 %v4795_v39 }
 0x4c9   : > { %4293 = vmatpush3.bf16.msra.mxu0 %v4776_v63 }
 0x4ca   : > { %4294 = vmatprep.subr.bf16.mxu0 %v4777_v0  ;;  %4315 = vmatpush3.bf16.msra.mxu1 %v4797_v41 }
 0x4cb   : > { %4316 = vmatprep.subr.bf16.mxu1 %v4798_v42 }
 0x4cd   : > { %4295 = vmatpush3.bf16.msra.mxu0 %v4778_v1 }
 0x4ce   : > { %4296 = vmatprep.subr.bf16.mxu0 %v4779_v2  ;;  %4317 = vmatpush3.bf16.msra.mxu1 %v4800_v44 }
 0x4cf   : > { %4318 = vmatprep.subr.bf16.mxu1 %v4801_v45 }
 0x4d1   : > { %4297 = vmatpush3.bf16.msra.mxu0 %v4780_v3 }
 0x4d2   : > { %4298 = vmatprep.subr.bf16.mxu0 %v4781_v4  ;;  %4319 = vmatpush3.bf16.msra.mxu1 %v4803_v47  ;;  %v4808_v4 = vld [vmem:[#allocation7 + $0x1b8] sm:$0xff]  }
 0x4d3   : > { %4320 = vmatprep.subr.bf16.mxu1 %v4804_v48  ;;  %v4826_v47 = vld [vmem:[#allocation8 + $0xb8] sm:$0xff]  }
 0x4d5   : > { %4299 = vmatpush3.bf16.msra.mxu0 %v4782_v5 }
 0x4d6   : > { %4514 = vmatprep.subr.bf16.mxu0 %v5009_v36  ;;  %4321 = vmatpush3.bf16.msra.mxu1 %v4806_v50  ;;  %v4830_v50 = vld [vmem:[#allocation8 + $0xb0] sm:$0xff]  }
 0x4d7   : > { %4337 = vmatprep.subr.bf16.mxu1 %v4807_v51  ;;  %v4832_v51 = vld [vmem:[#allocation8 + $0xe8] sm:$0xff]  }
 0x578   : > { %v2317_v10 = vpop.f32.mrf.mxu1  ;;  %v4269_v11 = vpop.f32.mrf.mxu0 }
 0x57a   : > { %v4512_v12 = vpop.f32.mrf.mxu1  ;;  %v4270_v14 = vpop.f32.mrf.mxu0 }
 0x57b   : > { %v4271_v15 = vadd.f32 %v4270_v14, %v4269_v11  ;;  %v4812_v11 = vld [vmem:[#allocation7 + $0x1a8] sm:$0xff]   ;;  %v4813_v12 = vld [vmem:[#allocation7 + $0x1e0] sm:$0xff]   ;;  %v4815_v14 = vld [vmem:[#allocation7 + $0x1d8] sm:$0xff]  }
 0x57c   : > { %v2320_v16 = vpop.f32.mrf.mxu1  ;;  %v4272_v17 = vpop.f32.mrf.mxu0 }
 0x57d   : > { %v2277_v18 = vadd.f32 %v4271_v15, %v3924_v13  ;;  %v4816_v15 = vld [vmem:[#allocation7 + $0x198] sm:$0xff]  }
 0x57e   : > { %v4513_v19 = vpop.f32.mrf.mxu1  ;;  %v4273_v20 = vpop.f32.mrf.mxu0 }
 0x57f   : > { %v2318_v21 = vadd.f32 %v2317_v10, %v2277_v18  ;;  %v4274_v22 = vadd.f32 %v4273_v20, %v4272_v17  ;;  %v4811_v10 = vld [vmem:[#allocation7 + $0x1e8] sm:$0xff]   ;;  %v4818_v17 = vld [vmem:[#allocation7 + $0x190] sm:$0xff]   ;;  %v4821_v20 = vld [vmem:[#allocation7 + $0x1c0] sm:$0xff]  }
 0x580   : > { %v4819_v18 = vld [vmem:[#allocation7 + $0x1c8] sm:$0xff]  }
 0x581   : > { %v2280_v23 = vadd.f32 %v4274_v22, %v3924_v13  ;;  %v2326_v24 = vmul.f32 0.2, %v2318_v21  ;;  %vm2324_vm11 = vcmp.ge.f32.partialorder %v2318_v21, 0.0  ;;  %v4814_v13 = vld [vmem:[#allocation7 + $0x1a0] sm:$0xff]   ;;  %v4820_v19 = vld [vmem:[#allocation7 + $0x188] sm:$0xff]   ;;  %v4823_v22 = vld [vmem:[#allocation8 + $0x78] sm:$0xff]  }
 0x583   : > { %v2321_v25 = vadd.f32 %v2320_v16, %v2280_v23  ;;  %v2328_v27 = vsel %vm2324_vm11, %v2318_v21, %v2326_v24  ;;  %v4817_v16 = vld [vmem:[#allocation7 + $0x1d0] sm:$0xff]   ;;  %v4822_v21 = vld [vmem:[#allocation7 + $0x180] sm:$0xff]   ;;  %v4824_v23 = vld [vmem:[#allocation8 + $0xf8] sm:$0xff]  }
 0x584   : > { %v4825_v24 = vld [vmem:[#allocation8 + $0x38] sm:$0xff]  }
 0x585   : > { %vm2325_vm12 = vcmp.ge.f32.partialorder %v2321_v25, 0.0  ;;  %v2327_v26 = vmul.f32 0.2, %v2321_v25 }
 0x587   : > { %v2329_v28 = vsel %vm2325_vm12, %v2321_v25, %v2327_v26  ;;  %v4827_v25 = vld [vmem:[#allocation8 + $0x70] sm:$0xff]  }
 0x588   : > { %v2330_v30 = vpack.c.bf16 %v2329_v28, %v2328_v27  ;;  %v4829_v26 = vld [vmem:[#allocation8 + $0x30] sm:$0xff]  }
 0x58a   : > { %2502 = vmatmul.mubr.bf16.vlgmr.msra.gmra.mxu0 %v2330_v30  ;;  %v3968_v30 = vld [vmem:[%s5273_s4 + $0x3] ss:$0 sm:$0xff] }
 0x58b   : > { %4515 = vmatpush3.bf16.msra.mxu0 %v4784_v29  ;;  %4530 = vmatprep.mubr.msk.bf16.mxu0 %vm5010_vm0, %v5009_v36 }
 0x58c   : > { %4516 = vmatprep.subr.bf16.mxu0 %v5009_v36 }
 0x58f   : > { %4517 = vmatpush3.bf16.msra.mxu0 %v4787_v31 }
 0x590   : > { %4518 = vmatprep.subr.bf16.mxu0 %v5009_v36 }
 0x593   : > { %4519 = vmatpush3.bf16.msra.mxu0 %v4790_v33 }
 0x594   : > { %4520 = vmatprep.subr.bf16.mxu0 %v5009_v36 }
 0x597   : > { %4521 = vmatpush3.bf16.msra.mxu0 %v4793_v37 }
 0x598   : > { %4522 = vmatprep.subr.bf16.mxu0 %v5009_v36 }
 0x59b   : > { %4523 = vmatpush3.bf16.msra.mxu0 %v4796_v40 }
 0x59c   : > { %4524 = vmatprep.subr.bf16.mxu0 %v5009_v36 }
 0x59f   : > { %4525 = vmatpush3.bf16.msra.mxu0 %v4799_v43 }
 0x5a0   : > { %4526 = vmatprep.subr.bf16.mxu0 %v5009_v36 }
 0x5a3   : > { %4527 = vmatpush3.bf16.msra.mxu0 %v4802_v46 }
 0x5a4   : > { %4528 = vmatprep.subr.bf16.mxu0 %v5009_v36 }
 0x5a7   : > { %4529 = vmatpush3.bf16.msra.mxu0 %v4805_v49  ;;  %v4828_v49 = vld [vmem:[#allocation8 + $0xf0] sm:$0xff]  }
 0x5a8   : > { %4359 = vmatprep.subr.bf16.mxu0 %v4823_v22 }
 0x64a   : > { %v4300_v52 = vpop.f32.mrf.mxu0 }
 0x64c   : > { %v4301_v54 = vpop.f32.mrf.mxu0 }
 0x64d   : > { %v4302_v55 = vadd.f32 %v4301_v54, %v4300_v52  ;;  %v4831_v52 = vld [vmem:[#allocation8 + $0x68] sm:$0xff]  }
 0x64e   : > { %v4303_v56 = vpop.f32.mrf.mxu0  ;;  %v4833_v54 = vld [vmem:[#allocation8 + $0x28] sm:$0xff]  }
 0x64f   : > { %v2504_v57 = vadd.f32 %v4302_v55, %v3950_v53  ;;  %v4836_v55 = vld [vmem:[#allocation8 + $0xe0] sm:$0xff]  }
 0x650   : > { %v4304_v58 = vpop.f32.mrf.mxu0 }
 0x651   : > { %vm2510_vm13 = vcmp.ge.f32.partialorder %v2504_v57, 0.0  ;;  %v2512_v59 = vmul.f32 0.2, %v2504_v57  ;;  %v4305_v60 = vadd.f32 %v4304_v58, %v4303_v56  ;;  %v4835_v56 = vld [vmem:[#allocation8 + $0x60] sm:$0xff]  }
 0x652   : > { %v4837_v58 = vld [vmem:[#allocation8 + $0x20] sm:$0xff]  }
 0x653   : > { %v2514_v61 = vsel %vm2510_vm13, %v2504_v57, %v2512_v59  ;;  %v2507_v62 = vadd.f32 %v4305_v60, %v3950_v53  ;;  %v4834_v53 = vld [vmem:[#allocation8 + $0xa8] sm:$0xff]   ;;  %v4840_v59 = vld [vmem:[#allocation8 + $0xd8] sm:$0xff]  }
 0x654   : > { %2518 = vst [vmem:[#allocation2 + $0x6] ss:$-4 sps:$4 sm:$0x22] %v2514_v61   ;;  %2520 = vst [vmem:[#allocation2 + $0x4] ss:$-4 sps:$4 sm:$0x44] %v2514_v61  }
 0x655   : > { %2522 = vst [vmem:[#allocation2 + $0x2] ss:$-4 sps:$4 sm:$0x88] %v2514_v61   ;;  %2524 = vst [vmem:[#allocation2] sm:$0x10] %v2514_v61  ;;  %vm2511_vm14 = vcmp.ge.f32.partialorder %v2507_v62, 0.0  ;;  %v2832_v8 = vpack.c.bf16 %v2507_v62, %v2504_v57 }
 0x656   : > { %2533 = vst [vmem:[#allocation2 + $0x18] sm:$0x80] %v2514_v61  ;;  %v2513_v63 = vmul.f32 0.2, %v2507_v62  ;;  %v4838_v57 = vld [vmem:[#allocation8 + $0xa0] sm:$0xff]   ;;  %v4839_v60 = vld [vmem:[#allocation8 + $0x58] sm:$0xff]  }
 0x658   : > { %v2515_v0 = vsel %vm2511_vm14, %v2507_v62, %v2513_v63  ;;  %v4841_v62 = vld [vmem:[#allocation8 + $0x18] sm:$0xff]   ;;  %v4844_v63 = vld [vmem:[#allocation8 + $0xd0] sm:$0xff]  }
 0x659   : > { %2519 = vst [vmem:[#allocation2 + $0x1a] ss:$-4 sps:$4 sm:$0x44] %v2515_v0   ;;  %2521 = vst [vmem:[#allocation2 + $0x1c] ss:$-4 sps:$4 sm:$0x22] %v2515_v0   ;;  %v2591_v1 = vpack.c.bf16 %v2515_v0, %v2514_v61 }
 0x65a   : > { %2523 = vst [vmem:[#allocation2 + $0x1e] ss:$-4 sps:$4 sm:$0x11] %v2515_v0   ;;  %2525 = vst [vmem:[#allocation2 + $0x18] sm:$0x8] %v2515_v0 }
 0x65b   : > { %2532 = vst [vmem:[#allocation2] sm:$0x1] %v2515_v0  ;;  %2775 = vmatprep.mubr.bf16.mxu1 %v2591_v1  ;;  %v4846_v1 = vld [vmem:[#allocation8 + $0x90] sm:$0xff]  }
 0x661   : > { %v2589_v2 = vld [vmem:[#allocation2 + $0x18] sm:$0xff] }
 0x662   : > { %v2585_v3 = vld [vmem:[#allocation2] sm:$0xff]  ;;  %v2592_v5 = vpack.c.bf16 %v2589_v2, %v2515_v0  ;;  %v4843_v0 = vld [vmem:[#allocation8 + $0x50] sm:$0xff]  }
 0x663   : > { %v2590_v6 = vpack.c.bf16 %v2514_v61, %v2585_v3  ;;  %v4842_v61 = vld [vmem:[#allocation8 + $0x98] sm:$0xff]   ;;  %v4845_v2 = vld [vmem:[#allocation8 + $0x10] sm:$0xff]   ;;  %v4848_v3 = vld [vmem:[#allocation8 + $0xc8] sm:$0xff]  }
 0x664   : > { %4531 = vmatmul.mubr.bf16.vlgmr.msra.gmra.mxu0 %v2592_v5  ;;  %v4849_v5 = vld [vmem:[#allocation8 + $0x8] sm:$0xff]  }
 0x665   : > { %2776 = vmatmul.mubr.bf16.vlgmr.msra.gmra.mxu1 %v2590_v6  ;;  %4360 = vmatpush3.bf16.msra.mxu0 %v4825_v24  ;;  %v4850_v6 = vld [vmem:[#allocation8 + $0x88] sm:$0xff]  }
 0x666   : > { %3002 = vmatprep.mubr.bf16.mxu1 %v2832_v8  ;;  %4338 = vmatpush3.bf16.msra.mxu1 %v4808_v4  ;;  %v4847_v4 = vld [vmem:[#allocation8 + $0x48] sm:$0xff]   ;;  %v4852_v8 = vld [vmem:[#allocation8 + $0xc0] sm:$0xff]  }
 0x667   : > { %4339 = vmatprep.subr.bf16.mxu1 %v4809_v7  ;;  %4361 = vmatprep.subr.bf16.mxu0 %v4827_v25  ;;  %v4851_v7 = vld [vmem:[#allocation8 + $0x40] sm:$0xff]  }
 0x669   : > { %4362 = vmatpush3.bf16.msra.mxu0 %v4829_v26  ;;  %v4857_v26 = vld [vmem:[#allocation8 + $0x1b8] sm:$0xff]  }
 0x66a   : > { %4340 = vmatpush3.bf16.msra.mxu1 %v4810_v9  ;;  %4363 = vmatprep.subr.bf16.mxu0 %v4831_v52  ;;  %v4854_v9 = vld [vmem:[#allocation8 + $0x80] sm:$0xff]   ;;  %v4868_v52 = vld [vmem:[#allocation8 + $0x118] sm:$0xff]  }
 0x66b   : > { %4341 = vmatprep.subr.bf16.mxu1 %v4811_v10  ;;  %v4853_v10 = vld [vmem:[#allocation8] sm:$0xff]  }
 0x66d   : > { %4364 = vmatpush3.bf16.msra.mxu0 %v4833_v54  ;;  %v4872_v54 = vld [vmem:[#allocation8 + $0x190] sm:$0xff]  }
 0x66e   : > { %4342 = vmatpush3.bf16.msra.mxu1 %v4812_v11  ;;  %4365 = vmatprep.subr.bf16.mxu0 %v4835_v56  ;;  %v4855_v11 = vld [vmem:[#allocation8 + $0x178] sm:$0xff]   ;;  %v4873_v56 = vld [vmem:[#allocation8 + $0x148] sm:$0xff]  }
 0x66f   : > { %4343 = vmatprep.subr.bf16.mxu1 %v4813_v12 }
 0x671   : > { %4366 = vmatpush3.bf16.msra.mxu0 %v4837_v58  ;;  %v4874_v58 = vld [vmem:[#allocation8 + $0x108] sm:$0xff]  }
 0x672   : > { %4344 = vmatpush3.bf16.msra.mxu1 %v4814_v13  ;;  %4367 = vmatprep.subr.bf16.mxu0 %v4839_v60  ;;  %v3994_v13 = vld [vmem:[%s5275_s6 + $0x3] ss:$0 sm:$0xff] }
 0x673   : > { %4345 = vmatprep.subr.bf16.mxu1 %v4815_v14  ;;  %v4878_v60 = vld [vmem:[#allocation8 + $0x180] sm:$0xff]  }
 0x675   : > { %4368 = vmatpush3.bf16.msra.mxu0 %v4841_v62 }
 0x676   : > { %4346 = vmatpush3.bf16.msra.mxu1 %v4816_v15  ;;  %4369 = vmatprep.subr.bf16.mxu0 %v4843_v0 }
 0x677   : > { %4347 = vmatprep.subr.bf16.mxu1 %v4817_v16 }
 0x679   : > { %4370 = vmatpush3.bf16.msra.mxu0 %v4845_v2 }
 0x67a   : > { %4348 = vmatpush3.bf16.msra.mxu1 %v4818_v17  ;;  %4371 = vmatprep.subr.bf16.mxu0 %v4847_v4 }
 0x67b   : > { %4349 = vmatprep.subr.bf16.mxu1 %v4819_v18 }
 0x67d   : > { %4372 = vmatpush3.bf16.msra.mxu0 %v4849_v5 }
 0x67e   : > { %4350 = vmatpush3.bf16.msra.mxu1 %v4820_v19  ;;  %4373 = vmatprep.subr.bf16.mxu0 %v4851_v7 }
 0x67f   : > { %4351 = vmatprep.subr.bf16.mxu1 %v4821_v20 }
 0x681   : > { %4374 = vmatpush3.bf16.msra.mxu0 %v4853_v10 }
 0x682   : > { %4352 = vmatpush3.bf16.msra.mxu1 %v4822_v21  ;;  %4403 = vmatprep.subr.bf16.mxu0 %v4855_v11 }
 0x683   : > { %4381 = vmatprep.subr.bf16.mxu1 %v4824_v23 }
 0x724   : > { %v2818_v27 = vpop.f32.mrf.mxu0 }
 0x725   : > { %v4322_v28 = vpop.f32.mrf.mxu1 }
 0x726   : > { %v4532_v29 = vpop.f32.mrf.mxu0 }
 0x727   : > { %v4323_v31 = vpop.f32.mrf.mxu1 }
 0x728   : > { %v4324_v32 = vadd.f32 %v4323_v31, %v4322_v28  ;;  %v2821_v33 = vpop.f32.mrf.mxu0 }
 0x729   : > { %v4325_v34 = vpop.f32.mrf.mxu1 }
 0x72a   : > { %v2778_v35 = vadd.f32 %v4324_v32, %v3968_v30  ;;  %v4533_v37 = vpop.f32.mrf.mxu0 }
 0x72b   : > { %v4326_v38 = vpop.f32.mrf.mxu1  ;;  %v4856_v37 = vld [vmem:[#allocation8 + $0x138] sm:$0xff]  }
 0x72c   : > { %v2819_v39 = vadd.f32 %v2818_v27, %v2778_v35  ;;  %v4327_v40 = vadd.f32 %v4326_v38, %v4325_v34 }
 0x72e   : > { %v2781_v41 = vadd.f32 %v4327_v40, %v3968_v30  ;;  %v2827_v42 = vmul.f32 0.2, %v2819_v39  ;;  %vm2825_vm15 = vcmp.ge.f32.partialorder %v2819_v39, 0.0  ;;  %v4858_v40 = vld [vmem:[#allocation8 + $0x170] sm:$0xff]  }
 0x730   : > { %v2822_v43 = vadd.f32 %v2821_v33, %v2781_v41  ;;  %v2829_v45 = vsel %vm2825_vm15, %v2819_v39, %v2827_v42  ;;  %v4860_v42 = vld [vmem:[#allocation8 + $0x1b0] sm:$0xff]  }
 0x732   : > { %vm2826_vm1 = vcmp.ge.f32.partialorder %v2822_v43, 0.0  ;;  %v2828_v44 = vmul.f32 0.2, %v2822_v43 }
 0x734   : > { %v2830_v46 = vsel %vm2826_vm1, %v2822_v43, %v2828_v44  ;;  %v4859_v43 = vld [vmem:[#allocation8 + $0x130] sm:$0xff]   ;;  %v4861_v44 = vld [vmem:[#allocation8 + $0x168] sm:$0xff]  }
 0x735   : > { %v2831_v48 = vpack.c.bf16 %v2830_v46, %v2829_v45  ;;  %v4863_v45 = vld [vmem:[#allocation8 + $0x1a8] sm:$0xff]  }
 0x736   : > { %v4862_v46 = vld [vmem:[#allocation8 + $0x128] sm:$0xff]  }
 0x737   : > { %3003 = vmatmul.mubr.bf16.vlgmr.msra.gmra.mxu1 %v2831_v48  ;;  %v4866_v48 = vld [vmem:[#allocation8 + $0x1a0] sm:$0xff]  }
 0x738   : > { %4382 = vmatpush3.bf16.msra.mxu1 %v4826_v47  ;;  %v4864_v47 = vld [vmem:[#allocation8 + $0x160] sm:$0xff]  }
 0x739   : > { %4383 = vmatprep.subr.bf16.mxu1 %v4828_v49  ;;  %v4865_v49 = vld [vmem:[#allocation8 + $0x120] sm:$0xff]  }
 0x73c   : > { %4384 = vmatpush3.bf16.msra.mxu1 %v4830_v50  ;;  %v4867_v50 = vld [vmem:[#allocation8 + $0x158] sm:$0xff]  }
 0x73d   : > { %4385 = vmatprep.subr.bf16.mxu1 %v4832_v51  ;;  %v4869_v51 = vld [vmem:[#allocation8 + $0x198] sm:$0xff]  }
 0x740   : > { %4386 = vmatpush3.bf16.msra.mxu1 %v4834_v53  ;;  %v4870_v53 = vld [vmem:[#allocation8 + $0x150] sm:$0xff]  }
 0x741   : > { %4387 = vmatprep.subr.bf16.mxu1 %v4836_v55  ;;  %v4871_v55 = vld [vmem:[#allocation8 + $0x110] sm:$0xff]  }
 0x744   : > { %4388 = vmatpush3.bf16.msra.mxu1 %v4838_v57  ;;  %v4875_v57 = vld [vmem:[#allocation8 + $0x188] sm:$0xff]  }
 0x745   : > { %4389 = vmatprep.subr.bf16.mxu1 %v4840_v59  ;;  %v4876_v59 = vld [vmem:[#allocation8 + $0x140] sm:$0xff]  }
 0x748   : > { %4390 = vmatpush3.bf16.msra.mxu1 %v4842_v61  ;;  %v4877_v61 = vld [vmem:[#allocation8 + $0x100] sm:$0xff]  }
 0x749   : > { %4391 = vmatprep.subr.bf16.mxu1 %v4844_v63 }
 0x74c   : > { %4392 = vmatpush3.bf16.msra.mxu1 %v4846_v1 }
 0x74d   : > { %4393 = vmatprep.subr.bf16.mxu1 %v4848_v3 }
 0x750   : > { %4394 = vmatpush3.bf16.msra.mxu1 %v4850_v6 }
 0x751   : > { %4395 = vmatprep.subr.bf16.mxu1 %v4852_v8 }
 0x754   : > { %4396 = vmatpush3.bf16.msra.mxu1 %v4854_v9 }
 0x755   : > { %4534 = vmatprep.subr.bf16.mxu1 %v5009_v36 }
 0x7f7   : > { %v4353_v12 = vpop.f32.mrf.mxu1 }
 0x7f9   : > { %v4354_v14 = vpop.f32.mrf.mxu1 }
 0x7fa   : > { %v4355_v15 = vadd.f32 %v4354_v14, %v4353_v12 }
 0x7fb   : > { %v4356_v16 = vpop.f32.mrf.mxu1 }
 0x7fc   : > { %v3005_v17 = vadd.f32 %v4355_v15, %v3994_v13 }
 0x7fd   : > { %v4357_v18 = vpop.f32.mrf.mxu1 }
 0x7fe   : > { %vm3011_vm2 = vcmp.ge.f32.partialorder %v3005_v17, 0.0  ;;  %v3013_v19 = vmul.f32 0.2, %v3005_v17  ;;  %v4358_v20 = vadd.f32 %v4357_v18, %v4356_v16 }
 0x800   : > { %v3015_v21 = vsel %vm3011_vm2, %v3005_v17, %v3013_v19  ;;  %v3008_v22 = vadd.f32 %v4358_v20, %v3994_v13 }
 0x801   : > { %3019 = vst [vmem:[#allocation2 + $0x6] sm:$0x2] %v3015_v21  ;;  %3021 = vst [vmem:[#allocation2 + $0x4] sm:$0x4] %v3015_v21 }
 0x802   : > { %3023 = vst [vmem:[#allocation2 + $0x2] sm:$0x8] %v3015_v21  ;;  %3017 = vst [vmem:[#allocation2 + $0x8] sm:$0xff] %v3015_v21  ;;  %vm3012_vm3 = vcmp.ge.f32.partialorder %v3008_v22, 0.0  ;;  %v3014_v23 = vmul.f32 0.2, %v3008_v22 }
 0x804   : > { %v3016_v24 = vsel %vm3012_vm3, %v3008_v22, %v3014_v23 }
 0x805   : > { %3020 = vst [vmem:[#allocation2 + $0x12] sm:$0x40] %v3016_v24  ;;  %3022 = vst [vmem:[#allocation2 + $0x14] sm:$0x20] %v3016_v24  ;;  %v3155_v25 = vpack.c.bf16 %v3016_v24, %v3015_v21 }
 0x806   : > { %3024 = vst [vmem:[#allocation2 + $0x16] sm:$0x10] %v3016_v24  ;;  %3018 = vst [vmem:[#allocation2 + $0x10] sm:$0xff] %v3016_v24 }
 0x807   : > { %3574 = vmatprep.mubr.bf16.mxu1 %v3155_v25 }
 0x809   : > { %v3140_v27 = vld [vmem:[#allocation2 + $0x6] sm:$0xff] }
 0x80a   : > { %v3138_v28 = vld [vmem:[#allocation2 + $0x5] sm:$0xff] }
 0x80b   : > { %v3142_v29 = vld [vmem:[#allocation2 + $0x7] sm:$0xff] }
 0x80d   : > { %v3141_v30 = vld [vmem:[#allocation2 + $0xe] sm:$0xff] }
 0x80e   : > { %v3139_v31 = vld [vmem:[#allocation2 + $0xd] sm:$0xff]  ;;  %v3153_v33 = vpack.c.bf16 %v3141_v30, %v3140_v27 }
 0x80f   : > { %v3143_v32 = vld [vmem:[#allocation2 + $0xf] sm:$0xff]  ;;  %v3152_v34 = vpack.c.bf16 %v3139_v31, %v3138_v28 }
 0x810   : > { %v3154_v35 = vpack.c.bf16 %v3143_v32, %v3142_v29  ;;  %v3148_v38 = vld [vmem:[#allocation2 + $0xa] sm:$0xff]  ;;  %v3149_v39 = vld [vmem:[#allocation2 + $0x12] sm:$0xff]  ;;  %3533 = vmatprep.mubr.bf16.mxu0 %v3153_v33 }
 0x811   : > { %v3157_v41 = vpack.c.bf16 %v3149_v39, %v3148_v38  ;;  %3534 = vmatmul.mubr.bf16.vlgmr.msra.gmra.mxu0 %v3152_v34  ;;  %v3150_v62 = vld [vmem:[#allocation2 + $0xb] sm:$0xff]  ;;  %v3151_v63 = vld [vmem:[#allocation2 + $0x13] sm:$0xff] }
 0x812   : > { %3575 = vmatmul.mubr.bf16.vlgmr.msra.gmra.mxu1 %v3154_v35  ;;  %4404 = vmatpush3.bf16.msra.mxu0 %v4856_v37  ;;  %v3146_v0 = vld [vmem:[#allocation2 + $0x9] sm:$0xff]  ;;  %v3147_v1 = vld [vmem:[#allocation2 + $0x11] sm:$0xff]  ;;  %v3158_v2 = vpack.c.bf16 %v3151_v63, %v3150_v62 }
 0x813   : > { %4535 = vmatpush3.bf16.msra.mxu1 %v4857_v26  ;;  %3615 = vmatprep.mubr.bf16.mxu0 %v3157_v41  ;;  %v3156_v3 = vpack.c.bf16 %v3147_v1, %v3146_v0 }
 0x814   : > { %4405 = vmatprep.subr.bf16.mxu0 %v4858_v40  ;;  %4536 = vmatprep.subr.bf16.mxu1 %v5009_v36 }
 0x815   : > { %4550 = vmatprep.mubr.msk.bf16.mxu1 %vm5010_vm0, %v5009_v36 }
 0x816   : > { %4406 = vmatpush3.bf16.msra.mxu0 %v4859_v43 }
 0x817   : > { %4537 = vmatpush3.bf16.msra.mxu1 %v4860_v42  ;;  %4407 = vmatprep.subr.bf16.mxu0 %v4861_v44 }
 0x818   : > { %4538 = vmatprep.subr.bf16.mxu1 %v5009_v36 }
 0x81a   : > { %4408 = vmatpush3.bf16.msra.mxu0 %v4862_v46 }
 0x81b   : > { %4539 = vmatpush3.bf16.msra.mxu1 %v4863_v45  ;;  %4409 = vmatprep.subr.bf16.mxu0 %v4864_v47 }
 0x81c   : > { %4540 = vmatprep.subr.bf16.mxu1 %v5009_v36 }
 0x81e   : > { %4410 = vmatpush3.bf16.msra.mxu0 %v4865_v49 }
 0x81f   : > { %4541 = vmatpush3.bf16.msra.mxu1 %v4866_v48  ;;  %4411 = vmatprep.subr.bf16.mxu0 %v4867_v50 }
 0x820   : > { %4542 = vmatprep.subr.bf16.mxu1 %v5009_v36 }
 0x822   : > { %4412 = vmatpush3.bf16.msra.mxu0 %v4868_v52 }
 0x823   : > { %4543 = vmatpush3.bf16.msra.mxu1 %v4869_v51  ;;  %4413 = vmatprep.subr.bf16.mxu0 %v4870_v53 }
 0x824   : > { %4544 = vmatprep.subr.bf16.mxu1 %v5009_v36 }
 0x826   : > { %4414 = vmatpush3.bf16.msra.mxu0 %v4871_v55 }
 0x827   : > { %4545 = vmatpush3.bf16.msra.mxu1 %v4872_v54  ;;  %4415 = vmatprep.subr.bf16.mxu0 %v4873_v56 }
 0x828   : > { %4546 = vmatprep.subr.bf16.mxu1 %v5009_v36 }
 0x82a   : > { %4416 = vmatpush3.bf16.msra.mxu0 %v4874_v58 }
 0x82b   : > { %4547 = vmatpush3.bf16.msra.mxu1 %v4875_v57  ;;  %4417 = vmatprep.subr.bf16.mxu0 %v4876_v59 }
 0x82c   : > { %4548 = vmatprep.subr.bf16.mxu1 %v5009_v36  ;;  %v4011_v36 = vld [vmem:[%s5277_s8] ss:$0 sm:$0xff] }
 0x82e   : > { %4418 = vmatpush3.bf16.msra.mxu0 %v4877_v61 }
 0x82f   : > { %4549 = vmatpush3.bf16.msra.mxu1 %v4878_v60 }
 0x831   : > { %3616 = vmatmul.mubr.bf16.vlgmr.msra.gmra.mxu0 %v3156_v3 }
 0x832   : > { %4551 = vmatmul.mubr.bf16.vlgmr.msra.gmra.mxu1 %v3158_v2 }
 0x8d1   : > { %v4375_v4 = vpop.f32.mrf.mxu0 }
 0x8d2   : > { %v4397_v5 = vpop.f32.mrf.mxu1 }
 0x8d3   : > { %v4376_v6 = vpop.f32.mrf.mxu0 }
 0x8d4   : > { %v4398_v7 = vpop.f32.mrf.mxu1  ;;  %v4377_v10 = vadd.f32 %v4376_v6, %v4375_v4 }
 0x8d5   : > { %v4378_v8 = vpop.f32.mrf.mxu0  ;;  %v4399_v17 = vadd.f32 %v4398_v7, %v4397_v5 }
 0x8d6   : > { %v4400_v9 = vpop.f32.mrf.mxu1  ;;  %v3536_v13 = vadd.f32 %v4377_v10, %v4011_v36 }
 0x8d7   : > { %v4379_v11 = vpop.f32.mrf.mxu0 }
 0x8d8   : > { %v4401_v12 = vpop.f32.mrf.mxu1  ;;  %v4380_v14 = vadd.f32 %v4379_v11, %v4378_v8  ;;  %v3577_v20 = vadd.f32 %v4399_v17, %v3536_v13 }
 0x8d9   : > { %v4402_v25 = vadd.f32 %v4401_v12, %v4400_v9 }
 0x8da   : > { %v3539_v21 = vadd.f32 %v4380_v14, %v4011_v36 }
 0x8dc   : > { %v3580_v29 = vadd.f32 %v4402_v25, %v3539_v21 }
 0x8f1   : > { %v4419_v16 = vpop.f32.mrf.mxu0 }
 0x8f2   : > { %v3658_v15 = vpop.f32.mrf.mxu1 }
 0x8f3   : > { %v4420_v19 = vpop.f32.mrf.mxu0 }
 0x8f4   : > { %v4552_v18 = vpop.f32.mrf.mxu1  ;;  %v4421_v22 = vadd.f32 %v4420_v19, %v4419_v16 }
 0x8f5   : > { %v4422_v24 = vpop.f32.mrf.mxu0 }
 0x8f6   : > { %v3661_v23 = vpop.f32.mrf.mxu1  ;;  %v3618_v26 = vadd.f32 %v4421_v22, %v3577_v20 }
 0x8f7   : > { %v4423_v28 = vpop.f32.mrf.mxu0 }
 0x8f8   : > { %v4553_v27 = vpop.f32.mrf.mxu1  ;;  %v3659_v30 = vadd.f32 %v3658_v15, %v3618_v26  ;;  %v4424_v31 = vadd.f32 %v4423_v28, %v4422_v24 }
 0x8fa   : > { %3665 = vst [vmem:[%s391_s24] sm:$0xff] %v3659_v30  ;;  %v3621_v32 = vadd.f32 %v4424_v31, %v3580_v29 }
 0x8fc   : > { %v3662_v33 = vadd.f32 %v3661_v23, %v3621_v32 }
 0x8fe   : > { %3666 = vst [vmem:[%s391_s24 + $0x8] sm:$0xff] %v3662_v33 }
 0x8ff PF: > { %s22_s30 = sadd.s32 1, %s5001_s30  }
 0x900   : > { %p19_p3 = scmp.ge.s32.totalorder %s22_s30, 4  }
 0x902   :  { %21 = sbr.rel (!%p19_p3) target bundleno = 3 (0x3), region = 115 }
 0x907   :  { %3688 = vsyncpa [#allocation4], 1 }
 0x908   :  { %3690 = vsyncpa [#allocation4 + $0x1], 1 }
 0x909   :  { %3691 = vsyncpa [#allocation6], 1 }
 0x90a   :  { %3692 = vsyncpa [#allocation9], 1 }

</bundles_post_ra>
